<compile_context>
chip_gen: v7x
topology: tpu7x:2x2x1
jax: 0.10.0
libtpu: 0.0.40
codegen_flags: <defaults>
</compile_context>

<pallas_src>
import functools

import jax
import jax.numpy as jnp
from jax.experimental import pallas as pl
from jax.experimental.pallas import tpu as pltpu


# ----------------------------------------------------------------------------
# Fused Pallas kernel: 2-layer LSTM over the full sequence + classifier head.
# ----------------------------------------------------------------------------
def _lstm_cell(gates, c, H):
    """PyTorch gate order i, f, g, o.  One sigmoid over the contiguous [i|f] slab."""
    i_f = jax.nn.sigmoid(gates[:, :2 * H])
    i = i_f[:, :H]
    f = i_f[:, H:]
    g = jnp.tanh(gates[:, 2 * H:3 * H])
    o = jax.nn.sigmoid(gates[:, 3 * H:])
    c_new = f * c + i * g
    h_new = o * jnp.tanh(c_new)
    return h_new, c_new


def fused_lstm_classifier_kernel(seq_len, batch,
                                 x_ref,
                                 wih0_ref, whh0_ref, b0_ref,
                                 wih1_ref, whh1_ref, b1_ref,
                                 wlin_ref, blin_ref,
                                 out_ref):
    S, B = seq_len, batch
    H = whh0_ref.shape[0]

    # ---- layer 0: batched input projection over all timesteps (one big MXU push) ----
    proj0 = (jnp.dot(x_ref[...], wih0_ref[...], preferred_element_type=jnp.float32)
             + b0_ref[...])                                   # (S*B, 4H)

    h0 = jnp.zeros((B, H), jnp.float32)
    c0 = jnp.zeros((B, H), jnp.float32)
    h0_steps = []
    for t in range(S):                                        # static unroll (S is small)
        gates = proj0[t * B:(t + 1) * B, :] + jnp.dot(
            h0, whh0_ref[...], preferred_element_type=jnp.float32)
        h0, c0 = _lstm_cell(gates, c0, H)
        h0_steps.append(h0)

    # ---- layer 1: batched input projection of the layer-0 output sequence ----
    h0_seq = jnp.concatenate(h0_steps, axis=0)                # (S*B, H), stays in VMEM
    proj1 = (jnp.dot(h0_seq, wih1_ref[...], preferred_element_type=jnp.float32)
             + b1_ref[...])                                   # (S*B, 4H)

    h1 = jnp.zeros((B, H), jnp.float32)
    c1 = jnp.zeros((B, H), jnp.float32)
    for t in range(S):
        gates = proj1[t * B:(t + 1) * B, :] + jnp.dot(
            h1, whh1_ref[...], preferred_element_type=jnp.float32)
        h1, c1 = _lstm_cell(gates, c1, H)

    # ---- classifier head on the stacked final hidden states (h_n of both layers) ----
    # torch: h_n (n_layers, B, H) -> transpose(0,1).view(B, -1) == concat over layers.
    # self.dropout(h_n) is identity in eval mode.
    h_cat = jnp.concatenate([h0, h1], axis=-1)                # (B, 2H)
    out_ref[...] = (jnp.dot(h_cat, wlin_ref[...], preferred_element_type=jnp.float32)
                    + blin_ref[...]).astype(out_ref.dtype)


def classification_lstm_forward(params, x_ids):
    """x_ids: (S, B) int32 token ids.  Returns logits (B, output_dim)."""
    layers = params["lstm"]
    assert len(layers) == 2, "fused kernel implements the module default n_layers=2"

    S, B = x_ids.shape
    emb = params["embedding"][x_ids]                          # (S, B, E) gather (XLA glue)
    E = emb.shape[-1]
    x_flat = emb.reshape(S * B, E)                            # flatten time into rows

    l0, l1 = layers
    H = l0["w_hh_t"].shape[0]
    O = params["w_lin_t"].shape[1]

    kernel = functools.partial(fused_lstm_classifier_kernel, S, B)
    return pl.pallas_call(
        kernel,
        out_shape=jax.ShapeDtypeStruct((B, O), jnp.float32),
        in_specs=[
            pl.BlockSpec((S * B, E), lambda: (0, 0)),          # embedded inputs
            pl.BlockSpec((E, 4 * H), lambda: (0, 0)),          # W_ih layer 0
            pl.BlockSpec((H, 4 * H), lambda: (0, 0)),          # W_hh layer 0
            pl.BlockSpec((1, 4 * H), lambda: (0, 0)),          # bias  layer 0
            pl.BlockSpec((H, 4 * H), lambda: (0, 0)),          # W_ih layer 1
            pl.BlockSpec((H, 4 * H), lambda: (0, 0)),          # W_hh layer 1
            pl.BlockSpec((1, 4 * H), lambda: (0, 0)),          # bias  layer 1
            pl.BlockSpec((2 * H, O), lambda: (0, 0)),          # W_linear^T
            pl.BlockSpec((1, O), lambda: (0, 0)),              # b_linear
        ],
        out_specs=pl.BlockSpec((B, O), lambda: (0, 0)),
    )(x_flat,
      l0["w_ih_t"], l0["w_hh_t"], l0["b"],
      l1["w_ih_t"], l1["w_hh_t"], l1["b"],
      params["w_lin_t"], params["b_lin"])


# ----------------------------------------------------------------------------
# Parameter init (deterministic, PyTorch-style uniform(-1/sqrt(H), 1/sqrt(H)))
# ----------------------------------------------------------------------------
def init_params(key, vocab_size, embed_dim, hidden_dim, n_layers, output_dim, pad_idx):
    params = {}
    k_emb, key = jax.random.split(key)
    emb = jax.random.normal(k_emb, (vocab_size, embed_dim), jnp.float32)
    emb = emb.at[pad_idx].set(0.0)                            # padding_idx row is zero
    params["embedding"] = emb

    bound = 1.0 / jnp.sqrt(hidden_dim).astype(jnp.float32)
    layers = []
    for l in range(n_layers):
        in_dim = embed_dim if l == 0 else hidden_dim
        k1, k2, k3, k4, key = jax.random.split(key, 5)
        w_ih = jax.random.uniform(k1, (4 * hidden_dim, in_dim), jnp.float32, -bound, bound)
        w_hh = jax.random.uniform(k2, (4 * hidden_dim, hidden_dim), jnp.float32, -bound, bound)
        b_ih = jax.random.uniform(k3, (4 * hidden_dim,), jnp.float32, -bound, bound)
        b_hh = jax.random.uniform(k4, (4 * hidden_dim,), jnp.float32, -bound, bound)
        layers.append({
            "w_ih_t": w_ih.T,                                 # (in_dim, 4H)
            "w_hh_t": w_hh.T,                                 # (H, 4H)
            "b": (b_ih + b_hh)[None, :],                      # (1, 4H)
        })
    params["lstm"] = layers

    k5, k6, key = jax.random.split(key, 3)
    lin_in = hidden_dim * n_layers
    lbound = 1.0 / jnp.sqrt(lin_in).astype(jnp.float32)
    w_lin = jax.random.uniform(k5, (output_dim, lin_in), jnp.float32, -lbound, lbound)
    b_lin = jax.random.uniform(k6, (output_dim,), jnp.float32, -lbound, lbound)
    params["w_lin_t"] = w_lin.T                               # (n_layers*H, O)
    params["b_lin"] = b_lin[None, :]                          # (1, O)
    return params


# ----------------------------------------------------------------------------
# Pure-JAX reference for correctness checking
# ----------------------------------------------------------------------------
def _lstm_layer_ref(x, w_ih_t, w_hh_t, b):
    B = x.shape[1]
    H = w_hh_t.shape[0]

    def step(carry, x_t):
        h, c = carry
        gates = (x_t @ w_ih_t + b[0]) + h @ w_hh_t
        i = jax.nn.sigmoid(gates[:, :H])
        f = jax.nn.sigmoid(gates[:, H:2 * H])
        g = jnp.tanh(gates[:, 2 * H:3 * H])
        o = jax.nn.sigmoid(gates[:, 3 * H:])
        c = f * c + i * g
        h = o * jnp.tanh(c)
        return (h, c), h

    (h, c), ys = jax.lax.scan(step, (jnp.zeros((B, H)), jnp.zeros((B, H))), x)
    return ys, h, c


def forward_ref(params, x_ids):
    h = params["embedding"][x_ids]
    finals = []
    for lyr in params["lstm"]:
        h, h_n, _ = _lstm_layer_ref(h, lyr["w_ih_t"], lyr["w_hh_t"], lyr["b"])
        finals.append(h_n)
    h_cat = jnp.concatenate(finals, axis=-1)
    return h_cat @ params["w_lin_t"] + params["b_lin"]


if __name__ == "__main__":
    vocab_size, embed_dim, hidden_dim = 50, 32, 32
    n_layers, output_dim, pad_idx = 2, 5, 1
    seq_len, batch = 8, 8

    key = jax.random.PRNGKey(0)
    k_params, k_ids = jax.random.split(key)
    params = init_params(k_params, vocab_size, embed_dim, hidden_dim,
                         n_layers, output_dim, pad_idx)
    x_ids = jax.random.randint(k_ids, (seq_len, batch), 0, vocab_size, jnp.int32)

    fwd = jax.jit(functools.partial(classification_lstm_forward, params))
    logits = jax.block_until_ready(fwd(x_ids))

    ref = forward_ref(params, x_ids)
    assert logits.shape == (batch, output_dim)
    assert jnp.allclose(logits, ref, atol=1e-4, rtol=1e-4), "mismatch vs JAX reference"

    print("KERNEL_OK")
</pallas_src>

<mosaic_0001>
module attributes {stable_mosaic.version = 11 : i64} {
  func.func @fused_lstm_classifier_kernel(%arg0: memref<64x32xf32, #tpu.memory_space<vmem>>, %arg1: memref<32x128xf32, #tpu.memory_space<vmem>>, %arg2: memref<32x128xf32, #tpu.memory_space<vmem>>, %arg3: memref<1x128xf32, #tpu.memory_space<vmem>>, %arg4: memref<32x128xf32, #tpu.memory_space<vmem>>, %arg5: memref<32x128xf32, #tpu.memory_space<vmem>>, %arg6: memref<1x128xf32, #tpu.memory_space<vmem>>, %arg7: memref<64x5xf32, #tpu.memory_space<vmem>>, %arg8: memref<1x5xf32, #tpu.memory_space<vmem>>, %arg9: memref<8x5xf32, #tpu.memory_space<vmem>>) attributes {dimension_semantics = [], scalar_prefetch = 0 : i64, scratch_operands = 0 : i64, tpu.core_type = #tpu.core_type<tc>} {
    %c0 = arith.constant 0 : index
    %c0_0 = arith.constant 0 : index
    %0 = vector.load %arg0[%c0, %c0_0] : memref<64x32xf32, #tpu.memory_space<vmem>>, vector<64x32xf32>
    %c0_1 = arith.constant 0 : index
    %c0_2 = arith.constant 0 : index
    %1 = vector.load %arg1[%c0_1, %c0_2] : memref<32x128xf32, #tpu.memory_space<vmem>>, vector<32x128xf32>
    %cst = arith.constant dense<0.000000e+00> : vector<64x128xf32>
    %2 = tpu.matmul %0, %1, %cst {dimension_numbers = #tpu.dot_dimension_numbers<[1], [0], [0], [1], [0, 0, 1, 1], [], []>} : vector<64x32xf32>, vector<32x128xf32>, vector<64x128xf32> -> vector<64x128xf32>
    %c0_3 = arith.constant 0 : index
    %c0_4 = arith.constant 0 : index
    %3 = vector.load %arg3[%c0_3, %c0_4] : memref<1x128xf32, #tpu.memory_space<vmem>>, vector<1x128xf32>
    %4 = vector.broadcast %3 : vector<1x128xf32> to vector<64x128xf32>
    %5 = arith.addf %2, %4 : vector<64x128xf32>
    %cst_5 = arith.constant 0.000000e+00 : f32
    %6 = vector.broadcast %cst_5 : f32 to vector<8x32xf32>
    %cst_6 = arith.constant 0.000000e+00 : f32
    %7 = vector.broadcast %cst_6 : f32 to vector<8x32xf32>
    %8 = vector.extract_strided_slice %5 {offsets = [0, 0], sizes = [8, 128], strides = [1, 1]} : vector<64x128xf32> to vector<8x128xf32>
    %c0_7 = arith.constant 0 : index
    %c0_8 = arith.constant 0 : index
    %9 = vector.load %arg2[%c0_7, %c0_8] : memref<32x128xf32, #tpu.memory_space<vmem>>, vector<32x128xf32>
    %cst_9 = arith.constant dense<0.000000e+00> : vector<8x128xf32>
    %10 = tpu.matmul %6, %9, %cst_9 {dimension_numbers = #tpu.dot_dimension_numbers<[1], [0], [0], [1], [0, 0, 1, 1], [], []>} : vector<8x32xf32>, vector<32x128xf32>, vector<8x128xf32> -> vector<8x128xf32>
    %11 = arith.addf %8, %10 : vector<8x128xf32>
    %12 = vector.extract_strided_slice %11 {offsets = [0, 0], sizes = [8, 64], strides = [1, 1]} : vector<8x128xf32> to vector<8x64xf32>
    %13 = arith.negf %12 : vector<8x64xf32>
    %14 = math.exp %13 : vector<8x64xf32>
    %cst_10 = arith.constant 1.000000e+00 : f32
    %15 = vector.broadcast %cst_10 : f32 to vector<8x64xf32>
    %16 = arith.addf %15, %14 : vector<8x64xf32>
    %17 = arith.divf %15, %16 : vector<8x64xf32>
    %18 = vector.extract_strided_slice %17 {offsets = [0, 0], sizes = [8, 32], strides = [1, 1]} : vector<8x64xf32> to vector<8x32xf32>
    %19 = vector.extract_strided_slice %17 {offsets = [0, 32], sizes = [8, 32], strides = [1, 1]} : vector<8x64xf32> to vector<8x32xf32>
    %20 = vector.extract_strided_slice %11 {offsets = [0, 64], sizes = [8, 32], strides = [1, 1]} : vector<8x128xf32> to vector<8x32xf32>
    %21 = math.tanh %20 : vector<8x32xf32>
    %22 = vector.extract_strided_slice %11 {offsets = [0, 96], sizes = [8, 32], strides = [1, 1]} : vector<8x128xf32> to vector<8x32xf32>
    %23 = arith.negf %22 : vector<8x32xf32>
    %24 = math.exp %23 : vector<8x32xf32>
    %cst_11 = arith.constant 1.000000e+00 : f32
    %25 = vector.broadcast %cst_11 : f32 to vector<8x32xf32>
    %26 = arith.addf %25, %24 : vector<8x32xf32>
    %27 = arith.divf %25, %26 : vector<8x32xf32>
    %28 = arith.mulf %19, %7 : vector<8x32xf32>
    %29 = arith.mulf %18, %21 : vector<8x32xf32>
    %30 = arith.addf %28, %29 : vector<8x32xf32>
    %31 = math.tanh %30 : vector<8x32xf32>
    %32 = arith.mulf %27, %31 : vector<8x32xf32>
    %33 = vector.extract_strided_slice %5 {offsets = [8, 0], sizes = [8, 128], strides = [1, 1]} : vector<64x128xf32> to vector<8x128xf32>
    %c0_12 = arith.constant 0 : index
    %c0_13 = arith.constant 0 : index
    %34 = vector.load %arg2[%c0_12, %c0_13] : memref<32x128xf32, #tpu.memory_space<vmem>>, vector<32x128xf32>
    %cst_14 = arith.constant dense<0.000000e+00> : vector<8x128xf32>
    %35 = tpu.matmul %32, %34, %cst_14 {dimension_numbers = #tpu.dot_dimension_numbers<[1], [0], [0], [1], [0, 0, 1, 1], [], []>} : vector<8x32xf32>, vector<32x128xf32>, vector<8x128xf32> -> vector<8x128xf32>
    %36 = arith.addf %33, %35 : vector<8x128xf32>
    %37 = vector.extract_strided_slice %36 {offsets = [0, 0], sizes = [8, 64], strides = [1, 1]} : vector<8x128xf32> to vector<8x64xf32>
    %38 = arith.negf %37 : vector<8x64xf32>
    %39 = math.exp %38 : vector<8x64xf32>
    %cst_15 = arith.constant 1.000000e+00 : f32
    %40 = vector.broadcast %cst_15 : f32 to vector<8x64xf32>
    %41 = arith.addf %40, %39 : vector<8x64xf32>
    %42 = arith.divf %40, %41 : vector<8x64xf32>
    %43 = vector.extract_strided_slice %42 {offsets = [0, 0], sizes = [8, 32], strides = [1, 1]} : vector<8x64xf32> to vector<8x32xf32>
    %44 = vector.extract_strided_slice %42 {offsets = [0, 32], sizes = [8, 32], strides = [1, 1]} : vector<8x64xf32> to vector<8x32xf32>
    %45 = vector.extract_strided_slice %36 {offsets = [0, 64], sizes = [8, 32], strides = [1, 1]} : vector<8x128xf32> to vector<8x32xf32>
    %46 = math.tanh %45 : vector<8x32xf32>
    %47 = vector.extract_strided_slice %36 {offsets = [0, 96], sizes = [8, 32], strides = [1, 1]} : vector<8x128xf32> to vector<8x32xf32>
    %48 = arith.negf %47 : vector<8x32xf32>
    %49 = math.exp %48 : vector<8x32xf32>
    %cst_16 = arith.constant 1.000000e+00 : f32
    %50 = vector.broadcast %cst_16 : f32 to vector<8x32xf32>
    %51 = arith.addf %50, %49 : vector<8x32xf32>
    %52 = arith.divf %50, %51 : vector<8x32xf32>
    %53 = arith.mulf %44, %30 : vector<8x32xf32>
    %54 = arith.mulf %43, %46 : vector<8x32xf32>
    %55 = arith.addf %53, %54 : vector<8x32xf32>
    %56 = math.tanh %55 : vector<8x32xf32>
    %57 = arith.mulf %52, %56 : vector<8x32xf32>
    %58 = vector.extract_strided_slice %5 {offsets = [16, 0], sizes = [8, 128], strides = [1, 1]} : vector<64x128xf32> to vector<8x128xf32>
    %c0_17 = arith.constant 0 : index
    %c0_18 = arith.constant 0 : index
    %59 = vector.load %arg2[%c0_17, %c0_18] : memref<32x128xf32, #tpu.memory_space<vmem>>, vector<32x128xf32>
    %cst_19 = arith.constant dense<0.000000e+00> : vector<8x128xf32>
    %60 = tpu.matmul %57, %59, %cst_19 {dimension_numbers = #tpu.dot_dimension_numbers<[1], [0], [0], [1], [0, 0, 1, 1], [], []>} : vector<8x32xf32>, vector<32x128xf32>, vector<8x128xf32> -> vector<8x128xf32>
    %61 = arith.addf %58, %60 : vector<8x128xf32>
    %62 = vector.extract_strided_slice %61 {offsets = [0, 0], sizes = [8, 64], strides = [1, 1]} : vector<8x128xf32> to vector<8x64xf32>
    %63 = arith.negf %62 : vector<8x64xf32>
    %64 = math.exp %63 : vector<8x64xf32>
    %cst_20 = arith.constant 1.000000e+00 : f32
    %65 = vector.broadcast %cst_20 : f32 to vector<8x64xf32>
    %66 = arith.addf %65, %64 : vector<8x64xf32>
    %67 = arith.divf %65, %66 : vector<8x64xf32>
    %68 = vector.extract_strided_slice %67 {offsets = [0, 0], sizes = [8, 32], strides = [1, 1]} : vector<8x64xf32> to vector<8x32xf32>
    %69 = vector.extract_strided_slice %67 {offsets = [0, 32], sizes = [8, 32], strides = [1, 1]} : vector<8x64xf32> to vector<8x32xf32>
    %70 = vector.extract_strided_slice %61 {offsets = [0, 64], sizes = [8, 32], strides = [1, 1]} : vector<8x128xf32> to vector<8x32xf32>
    %71 = math.tanh %70 : vector<8x32xf32>
    %72 = vector.extract_strided_slice %61 {offsets = [0, 96], sizes = [8, 32], strides = [1, 1]} : vector<8x128xf32> to vector<8x32xf32>
    %73 = arith.negf %72 : vector<8x32xf32>
    %74 = math.exp %73 : vector<8x32xf32>
    %cst_21 = arith.constant 1.000000e+00 : f32
    %75 = vector.broadcast %cst_21 : f32 to vector<8x32xf32>
    %76 = arith.addf %75, %74 : vector<8x32xf32>
    %77 = arith.divf %75, %76 : vector<8x32xf32>
    %78 = arith.mulf %69, %55 : vector<8x32xf32>
    %79 = arith.mulf %68, %71 : vector<8x32xf32>
    %80 = arith.addf %78, %79 : vector<8x32xf32>
    %81 = math.tanh %80 : vector<8x32xf32>
    %82 = arith.mulf %77, %81 : vector<8x32xf32>
    %83 = vector.extract_strided_slice %5 {offsets = [24, 0], sizes = [8, 128], strides = [1, 1]} : vector<64x128xf32> to vector<8x128xf32>
    %c0_22 = arith.constant 0 : index
    %c0_23 = arith.constant 0 : index
    %84 = vector.load %arg2[%c0_22, %c0_23] : memref<32x128xf32, #tpu.memory_space<vmem>>, vector<32x128xf32>
    %cst_24 = arith.constant dense<0.000000e+00> : vector<8x128xf32>
    %85 = tpu.matmul %82, %84, %cst_24 {dimension_numbers = #tpu.dot_dimension_numbers<[1], [0], [0], [1], [0, 0, 1, 1], [], []>} : vector<8x32xf32>, vector<32x128xf32>, vector<8x128xf32> -> vector<8x128xf32>
    %86 = arith.addf %83, %85 : vector<8x128xf32>
    %87 = vector.extract_strided_slice %86 {offsets = [0, 0], sizes = [8, 64], strides = [1, 1]} : vector<8x128xf32> to vector<8x64xf32>
    %88 = arith.negf %87 : vector<8x64xf32>
    %89 = math.exp %88 : vector<8x64xf32>
    %cst_25 = arith.constant 1.000000e+00 : f32
    %90 = vector.broadcast %cst_25 : f32 to vector<8x64xf32>
    %91 = arith.addf %90, %89 : vector<8x64xf32>
    %92 = arith.divf %90, %91 : vector<8x64xf32>
    %93 = vector.extract_strided_slice %92 {offsets = [0, 0], sizes = [8, 32], strides = [1, 1]} : vector<8x64xf32> to vector<8x32xf32>
    %94 = vector.extract_strided_slice %92 {offsets = [0, 32], sizes = [8, 32], strides = [1, 1]} : vector<8x64xf32> to vector<8x32xf32>
    %95 = vector.extract_strided_slice %86 {offsets = [0, 64], sizes = [8, 32], strides = [1, 1]} : vector<8x128xf32> to vector<8x32xf32>
    %96 = math.tanh %95 : vector<8x32xf32>
    %97 = vector.extract_strided_slice %86 {offsets = [0, 96], sizes = [8, 32], strides = [1, 1]} : vector<8x128xf32> to vector<8x32xf32>
    %98 = arith.negf %97 : vector<8x32xf32>
    %99 = math.exp %98 : vector<8x32xf32>
    %cst_26 = arith.constant 1.000000e+00 : f32
    %100 = vector.broadcast %cst_26 : f32 to vector<8x32xf32>
    %101 = arith.addf %100, %99 : vector<8x32xf32>
    %102 = arith.divf %100, %101 : vector<8x32xf32>
    %103 = arith.mulf %94, %80 : vector<8x32xf32>
    %104 = arith.mulf %93, %96 : vector<8x32xf32>
    %105 = arith.addf %103, %104 : vector<8x32xf32>
    %106 = math.tanh %105 : vector<8x32xf32>
    %107 = arith.mulf %102, %106 : vector<8x32xf32>
    %108 = vector.extract_strided_slice %5 {offsets = [32, 0], sizes = [8, 128], strides = [1, 1]} : vector<64x128xf32> to vector<8x128xf32>
    %c0_27 = arith.constant 0 : index
    %c0_28 = arith.constant 0 : index
    %109 = vector.load %arg2[%c0_27, %c0_28] : memref<32x128xf32, #tpu.memory_space<vmem>>, vector<32x128xf32>
    %cst_29 = arith.constant dense<0.000000e+00> : vector<8x128xf32>
    %110 = tpu.matmul %107, %109, %cst_29 {dimension_numbers = #tpu.dot_dimension_numbers<[1], [0], [0], [1], [0, 0, 1, 1], [], []>} : vector<8x32xf32>, vector<32x128xf32>, vector<8x128xf32> -> vector<8x128xf32>
    %111 = arith.addf %108, %110 : vector<8x128xf32>
    %112 = vector.extract_strided_slice %111 {offsets = [0, 0], sizes = [8, 64], strides = [1, 1]} : vector<8x128xf32> to vector<8x64xf32>
    %113 = arith.negf %112 : vector<8x64xf32>
    %114 = math.exp %113 : vector<8x64xf32>
    %cst_30 = arith.constant 1.000000e+00 : f32
    %115 = vector.broadcast %cst_30 : f32 to vector<8x64xf32>
    %116 = arith.addf %115, %114 : vector<8x64xf32>
    %117 = arith.divf %115, %116 : vector<8x64xf32>
    %118 = vector.extract_strided_slice %117 {offsets = [0, 0], sizes = [8, 32], strides = [1, 1]} : vector<8x64xf32> to vector<8x32xf32>
    %119 = vector.extract_strided_slice %117 {offsets = [0, 32], sizes = [8, 32], strides = [1, 1]} : vector<8x64xf32> to vector<8x32xf32>
    %120 = vector.extract_strided_slice %111 {offsets = [0, 64], sizes = [8, 32], strides = [1, 1]} : vector<8x128xf32> to vector<8x32xf32>
    %121 = math.tanh %120 : vector<8x32xf32>
    %122 = vector.extract_strided_slice %111 {offsets = [0, 96], sizes = [8, 32], strides = [1, 1]} : vector<8x128xf32> to vector<8x32xf32>
    %123 = arith.negf %122 : vector<8x32xf32>
    %124 = math.exp %123 : vector<8x32xf32>
    %cst_31 = arith.constant 1.000000e+00 : f32
    %125 = vector.broadcast %cst_31 : f32 to vector<8x32xf32>
    %126 = arith.addf %125, %124 : vector<8x32xf32>
    %127 = arith.divf %125, %126 : vector<8x32xf32>
    %128 = arith.mulf %119, %105 : vector<8x32xf32>
    %129 = arith.mulf %118, %121 : vector<8x32xf32>
    %130 = arith.addf %128, %129 : vector<8x32xf32>
    %131 = math.tanh %130 : vector<8x32xf32>
    %132 = arith.mulf %127, %131 : vector<8x32xf32>
    %133 = vector.extract_strided_slice %5 {offsets = [40, 0], sizes = [8, 128], strides = [1, 1]} : vector<64x128xf32> to vector<8x128xf32>
    %c0_32 = arith.constant 0 : index
    %c0_33 = arith.constant 0 : index
    %134 = vector.load %arg2[%c0_32, %c0_33] : memref<32x128xf32, #tpu.memory_space<vmem>>, vector<32x128xf32>
    %cst_34 = arith.constant dense<0.000000e+00> : vector<8x128xf32>
    %135 = tpu.matmul %132, %134, %cst_34 {dimension_numbers = #tpu.dot_dimension_numbers<[1], [0], [0], [1], [0, 0, 1, 1], [], []>} : vector<8x32xf32>, vector<32x128xf32>, vector<8x128xf32> -> vector<8x128xf32>
    %136 = arith.addf %133, %135 : vector<8x128xf32>
    %137 = vector.extract_strided_slice %136 {offsets = [0, 0], sizes = [8, 64], strides = [1, 1]} : vector<8x128xf32> to vector<8x64xf32>
    %138 = arith.negf %137 : vector<8x64xf32>
    %139 = math.exp %138 : vector<8x64xf32>
    %cst_35 = arith.constant 1.000000e+00 : f32
    %140 = vector.broadcast %cst_35 : f32 to vector<8x64xf32>
    %141 = arith.addf %140, %139 : vector<8x64xf32>
    %142 = arith.divf %140, %141 : vector<8x64xf32>
    %143 = vector.extract_strided_slice %142 {offsets = [0, 0], sizes = [8, 32], strides = [1, 1]} : vector<8x64xf32> to vector<8x32xf32>
    %144 = vector.extract_strided_slice %142 {offsets = [0, 32], sizes = [8, 32], strides = [1, 1]} : vector<8x64xf32> to vector<8x32xf32>
    %145 = vector.extract_strided_slice %136 {offsets = [0, 64], sizes = [8, 32], strides = [1, 1]} : vector<8x128xf32> to vector<8x32xf32>
    %146 = math.tanh %145 : vector<8x32xf32>
    %147 = vector.extract_strided_slice %136 {offsets = [0, 96], sizes = [8, 32], strides = [1, 1]} : vector<8x128xf32> to vector<8x32xf32>
    %148 = arith.negf %147 : vector<8x32xf32>
    %149 = math.exp %148 : vector<8x32xf32>
    %cst_36 = arith.constant 1.000000e+00 : f32
    %150 = vector.broadcast %cst_36 : f32 to vector<8x32xf32>
    %151 = arith.addf %150, %149 : vector<8x32xf32>
    %152 = arith.divf %150, %151 : vector<8x32xf32>
    %153 = arith.mulf %144, %130 : vector<8x32xf32>
    %154 = arith.mulf %143, %146 : vector<8x32xf32>
    %155 = arith.addf %153, %154 : vector<8x32xf32>
    %156 = math.tanh %155 : vector<8x32xf32>
    %157 = arith.mulf %152, %156 : vector<8x32xf32>
    %158 = vector.extract_strided_slice %5 {offsets = [48, 0], sizes = [8, 128], strides = [1, 1]} : vector<64x128xf32> to vector<8x128xf32>
    %c0_37 = arith.constant 0 : index
    %c0_38 = arith.constant 0 : index
    %159 = vector.load %arg2[%c0_37, %c0_38] : memref<32x128xf32, #tpu.memory_space<vmem>>, vector<32x128xf32>
    %cst_39 = arith.constant dense<0.000000e+00> : vector<8x128xf32>
    %160 = tpu.matmul %157, %159, %cst_39 {dimension_numbers = #tpu.dot_dimension_numbers<[1], [0], [0], [1], [0, 0, 1, 1], [], []>} : vector<8x32xf32>, vector<32x128xf32>, vector<8x128xf32> -> vector<8x128xf32>
    %161 = arith.addf %158, %160 : vector<8x128xf32>
    %162 = vector.extract_strided_slice %161 {offsets = [0, 0], sizes = [8, 64], strides = [1, 1]} : vector<8x128xf32> to vector<8x64xf32>
    %163 = arith.negf %162 : vector<8x64xf32>
    %164 = math.exp %163 : vector<8x64xf32>
    %cst_40 = arith.constant 1.000000e+00 : f32
    %165 = vector.broadcast %cst_40 : f32 to vector<8x64xf32>
    %166 = arith.addf %165, %164 : vector<8x64xf32>
    %167 = arith.divf %165, %166 : vector<8x64xf32>
    %168 = vector.extract_strided_slice %167 {offsets = [0, 0], sizes = [8, 32], strides = [1, 1]} : vector<8x64xf32> to vector<8x32xf32>
    %169 = vector.extract_strided_slice %167 {offsets = [0, 32], sizes = [8, 32], strides = [1, 1]} : vector<8x64xf32> to vector<8x32xf32>
    %170 = vector.extract_strided_slice %161 {offsets = [0, 64], sizes = [8, 32], strides = [1, 1]} : vector<8x128xf32> to vector<8x32xf32>
    %171 = math.tanh %170 : vector<8x32xf32>
    %172 = vector.extract_strided_slice %161 {offsets = [0, 96], sizes = [8, 32], strides = [1, 1]} : vector<8x128xf32> to vector<8x32xf32>
    %173 = arith.negf %172 : vector<8x32xf32>
    %174 = math.exp %173 : vector<8x32xf32>
    %cst_41 = arith.constant 1.000000e+00 : f32
    %175 = vector.broadcast %cst_41 : f32 to vector<8x32xf32>
    %176 = arith.addf %175, %174 : vector<8x32xf32>
    %177 = arith.divf %175, %176 : vector<8x32xf32>
    %178 = arith.mulf %169, %155 : vector<8x32xf32>
    %179 = arith.mulf %168, %171 : vector<8x32xf32>
    %180 = arith.addf %178, %179 : vector<8x32xf32>
    %181 = math.tanh %180 : vector<8x32xf32>
    %182 = arith.mulf %177, %181 : vector<8x32xf32>
    %183 = vector.extract_strided_slice %5 {offsets = [56, 0], sizes = [8, 128], strides = [1, 1]} : vector<64x128xf32> to vector<8x128xf32>
    %c0_42 = arith.constant 0 : index
    %c0_43 = arith.constant 0 : index
    %184 = vector.load %arg2[%c0_42, %c0_43] : memref<32x128xf32, #tpu.memory_space<vmem>>, vector<32x128xf32>
    %cst_44 = arith.constant dense<0.000000e+00> : vector<8x128xf32>
    %185 = tpu.matmul %182, %184, %cst_44 {dimension_numbers = #tpu.dot_dimension_numbers<[1], [0], [0], [1], [0, 0, 1, 1], [], []>} : vector<8x32xf32>, vector<32x128xf32>, vector<8x128xf32> -> vector<8x128xf32>
    %186 = arith.addf %183, %185 : vector<8x128xf32>
    %187 = vector.extract_strided_slice %186 {offsets = [0, 0], sizes = [8, 64], strides = [1, 1]} : vector<8x128xf32> to vector<8x64xf32>
    %188 = arith.negf %187 : vector<8x64xf32>
    %189 = math.exp %188 : vector<8x64xf32>
    %cst_45 = arith.constant 1.000000e+00 : f32
    %190 = vector.broadcast %cst_45 : f32 to vector<8x64xf32>
    %191 = arith.addf %190, %189 : vector<8x64xf32>
    %192 = arith.divf %190, %191 : vector<8x64xf32>
    %193 = vector.extract_strided_slice %192 {offsets = [0, 0], sizes = [8, 32], strides = [1, 1]} : vector<8x64xf32> to vector<8x32xf32>
    %194 = vector.extract_strided_slice %192 {offsets = [0, 32], sizes = [8, 32], strides = [1, 1]} : vector<8x64xf32> to vector<8x32xf32>
    %195 = vector.extract_strided_slice %186 {offsets = [0, 64], sizes = [8, 32], strides = [1, 1]} : vector<8x128xf32> to vector<8x32xf32>
    %196 = math.tanh %195 : vector<8x32xf32>
    %197 = vector.extract_strided_slice %186 {offsets = [0, 96], sizes = [8, 32], strides = [1, 1]} : vector<8x128xf32> to vector<8x32xf32>
    %198 = arith.negf %197 : vector<8x32xf32>
    %199 = math.exp %198 : vector<8x32xf32>
    %cst_46 = arith.constant 1.000000e+00 : f32
    %200 = vector.broadcast %cst_46 : f32 to vector<8x32xf32>
    %201 = arith.addf %200, %199 : vector<8x32xf32>
    %202 = arith.divf %200, %201 : vector<8x32xf32>
    %203 = arith.mulf %194, %180 : vector<8x32xf32>
    %204 = arith.mulf %193, %196 : vector<8x32xf32>
    %205 = arith.addf %203, %204 : vector<8x32xf32>
    %206 = math.tanh %205 : vector<8x32xf32>
    %207 = arith.mulf %202, %206 : vector<8x32xf32>
    %208 = tpu.concatenate %32, %57, %82, %107, %132, %157, %182, %207 in 0 : vector<8x32xf32>, vector<8x32xf32>, vector<8x32xf32>, vector<8x32xf32>, vector<8x32xf32>, vector<8x32xf32>, vector<8x32xf32>, vector<8x32xf32> -> vector<64x32xf32>
    %c0_47 = arith.constant 0 : index
    %c0_48 = arith.constant 0 : index
    %209 = vector.load %arg4[%c0_47, %c0_48] : memref<32x128xf32, #tpu.memory_space<vmem>>, vector<32x128xf32>
    %cst_49 = arith.constant dense<0.000000e+00> : vector<64x128xf32>
    %210 = tpu.matmul %208, %209, %cst_49 {dimension_numbers = #tpu.dot_dimension_numbers<[1], [0], [0], [1], [0, 0, 1, 1], [], []>} : vector<64x32xf32>, vector<32x128xf32>, vector<64x128xf32> -> vector<64x128xf32>
    %c0_50 = arith.constant 0 : index
    %c0_51 = arith.constant 0 : index
    %211 = vector.load %arg6[%c0_50, %c0_51] : memref<1x128xf32, #tpu.memory_space<vmem>>, vector<1x128xf32>
    %212 = vector.broadcast %211 : vector<1x128xf32> to vector<64x128xf32>
    %213 = arith.addf %210, %212 : vector<64x128xf32>
    %cst_52 = arith.constant 0.000000e+00 : f32
    %214 = vector.broadcast %cst_52 : f32 to vector<8x32xf32>
    %cst_53 = arith.constant 0.000000e+00 : f32
    %215 = vector.broadcast %cst_53 : f32 to vector<8x32xf32>
    %216 = vector.extract_strided_slice %213 {offsets = [0, 0], sizes = [8, 128], strides = [1, 1]} : vector<64x128xf32> to vector<8x128xf32>
    %c0_54 = arith.constant 0 : index
    %c0_55 = arith.constant 0 : index
    %217 = vector.load %arg5[%c0_54, %c0_55] : memref<32x128xf32, #tpu.memory_space<vmem>>, vector<32x128xf32>
    %cst_56 = arith.constant dense<0.000000e+00> : vector<8x128xf32>
    %218 = tpu.matmul %214, %217, %cst_56 {dimension_numbers = #tpu.dot_dimension_numbers<[1], [0], [0], [1], [0, 0, 1, 1], [], []>} : vector<8x32xf32>, vector<32x128xf32>, vector<8x128xf32> -> vector<8x128xf32>
    %219 = arith.addf %216, %218 : vector<8x128xf32>
    %220 = vector.extract_strided_slice %219 {offsets = [0, 0], sizes = [8, 64], strides = [1, 1]} : vector<8x128xf32> to vector<8x64xf32>
    %221 = arith.negf %220 : vector<8x64xf32>
    %222 = math.exp %221 : vector<8x64xf32>
    %cst_57 = arith.constant 1.000000e+00 : f32
    %223 = vector.broadcast %cst_57 : f32 to vector<8x64xf32>
    %224 = arith.addf %223, %222 : vector<8x64xf32>
    %225 = arith.divf %223, %224 : vector<8x64xf32>
    %226 = vector.extract_strided_slice %225 {offsets = [0, 0], sizes = [8, 32], strides = [1, 1]} : vector<8x64xf32> to vector<8x32xf32>
    %227 = vector.extract_strided_slice %225 {offsets = [0, 32], sizes = [8, 32], strides = [1, 1]} : vector<8x64xf32> to vector<8x32xf32>
    %228 = vector.extract_strided_slice %219 {offsets = [0, 64], sizes = [8, 32], strides = [1, 1]} : vector<8x128xf32> to vector<8x32xf32>
    %229 = math.tanh %228 : vector<8x32xf32>
    %230 = vector.extract_strided_slice %219 {offsets = [0, 96], sizes = [8, 32], strides = [1, 1]} : vector<8x128xf32> to vector<8x32xf32>
    %231 = arith.negf %230 : vector<8x32xf32>
    %232 = math.exp %231 : vector<8x32xf32>
    %cst_58 = arith.constant 1.000000e+00 : f32
    %233 = vector.broadcast %cst_58 : f32 to vector<8x32xf32>
    %234 = arith.addf %233, %232 : vector<8x32xf32>
    %235 = arith.divf %233, %234 : vector<8x32xf32>
    %236 = arith.mulf %227, %215 : vector<8x32xf32>
    %237 = arith.mulf %226, %229 : vector<8x32xf32>
    %238 = arith.addf %236, %237 : vector<8x32xf32>
    %239 = math.tanh %238 : vector<8x32xf32>
    %240 = arith.mulf %235, %239 : vector<8x32xf32>
    %241 = vector.extract_strided_slice %213 {offsets = [8, 0], sizes = [8, 128], strides = [1, 1]} : vector<64x128xf32> to vector<8x128xf32>
    %c0_59 = arith.constant 0 : index
    %c0_60 = arith.constant 0 : index
    %242 = vector.load %arg5[%c0_59, %c0_60] : memref<32x128xf32, #tpu.memory_space<vmem>>, vector<32x128xf32>
    %cst_61 = arith.constant dense<0.000000e+00> : vector<8x128xf32>
    %243 = tpu.matmul %240, %242, %cst_61 {dimension_numbers = #tpu.dot_dimension_numbers<[1], [0], [0], [1], [0, 0, 1, 1], [], []>} : vector<8x32xf32>, vector<32x128xf32>, vector<8x128xf32> -> vector<8x128xf32>
    %244 = arith.addf %241, %243 : vector<8x128xf32>
    %245 = vector.extract_strided_slice %244 {offsets = [0, 0], sizes = [8, 64], strides = [1, 1]} : vector<8x128xf32> to vector<8x64xf32>
    %246 = arith.negf %245 : vector<8x64xf32>
    %247 = math.exp %246 : vector<8x64xf32>
    %cst_62 = arith.constant 1.000000e+00 : f32
    %248 = vector.broadcast %cst_62 : f32 to vector<8x64xf32>
    %249 = arith.addf %248, %247 : vector<8x64xf32>
    %250 = arith.divf %248, %249 : vector<8x64xf32>
    %251 = vector.extract_strided_slice %250 {offsets = [0, 0], sizes = [8, 32], strides = [1, 1]} : vector<8x64xf32> to vector<8x32xf32>
    %252 = vector.extract_strided_slice %250 {offsets = [0, 32], sizes = [8, 32], strides = [1, 1]} : vector<8x64xf32> to vector<8x32xf32>
    %253 = vector.extract_strided_slice %244 {offsets = [0, 64], sizes = [8, 32], strides = [1, 1]} : vector<8x128xf32> to vector<8x32xf32>
    %254 = math.tanh %253 : vector<8x32xf32>
    %255 = vector.extract_strided_slice %244 {offsets = [0, 96], sizes = [8, 32], strides = [1, 1]} : vector<8x128xf32> to vector<8x32xf32>
    %256 = arith.negf %255 : vector<8x32xf32>
    %257 = math.exp %256 : vector<8x32xf32>
    %cst_63 = arith.constant 1.000000e+00 : f32
    %258 = vector.broadcast %cst_63 : f32 to vector<8x32xf32>
    %259 = arith.addf %258, %257 : vector<8x32xf32>
    %260 = arith.divf %258, %259 : vector<8x32xf32>
    %261 = arith.mulf %252, %238 : vector<8x32xf32>
    %262 = arith.mulf %251, %254 : vector<8x32xf32>
    %263 = arith.addf %261, %262 : vector<8x32xf32>
    %264 = math.tanh %263 : vector<8x32xf32>
    %265 = arith.mulf %260, %264 : vector<8x32xf32>
    %266 = vector.extract_strided_slice %213 {offsets = [16, 0], sizes = [8, 128], strides = [1, 1]} : vector<64x128xf32> to vector<8x128xf32>
    %c0_64 = arith.constant 0 : index
    %c0_65 = arith.constant 0 : index
    %267 = vector.load %arg5[%c0_64, %c0_65] : memref<32x128xf32, #tpu.memory_space<vmem>>, vector<32x128xf32>
    %cst_66 = arith.constant dense<0.000000e+00> : vector<8x128xf32>
    %268 = tpu.matmul %265, %267, %cst_66 {dimension_numbers = #tpu.dot_dimension_numbers<[1], [0], [0], [1], [0, 0, 1, 1], [], []>} : vector<8x32xf32>, vector<32x128xf32>, vector<8x128xf32> -> vector<8x128xf32>
    %269 = arith.addf %266, %268 : vector<8x128xf32>
    %270 = vector.extract_strided_slice %269 {offsets = [0, 0], sizes = [8, 64], strides = [1, 1]} : vector<8x128xf32> to vector<8x64xf32>
    %271 = arith.negf %270 : vector<8x64xf32>
    %272 = math.exp %271 : vector<8x64xf32>
    %cst_67 = arith.constant 1.000000e+00 : f32
    %273 = vector.broadcast %cst_67 : f32 to vector<8x64xf32>
    %274 = arith.addf %273, %272 : vector<8x64xf32>
    %275 = arith.divf %273, %274 : vector<8x64xf32>
    %276 = vector.extract_strided_slice %275 {offsets = [0, 0], sizes = [8, 32], strides = [1, 1]} : vector<8x64xf32> to vector<8x32xf32>
    %277 = vector.extract_strided_slice %275 {offsets = [0, 32], sizes = [8, 32], strides = [1, 1]} : vector<8x64xf32> to vector<8x32xf32>
    %278 = vector.extract_strided_slice %269 {offsets = [0, 64], sizes = [8, 32], strides = [1, 1]} : vector<8x128xf32> to vector<8x32xf32>
    %279 = math.tanh %278 : vector<8x32xf32>
    %280 = vector.extract_strided_slice %269 {offsets = [0, 96], sizes = [8, 32], strides = [1, 1]} : vector<8x128xf32> to vector<8x32xf32>
    %281 = arith.negf %280 : vector<8x32xf32>
    %282 = math.exp %281 : vector<8x32xf32>
    %cst_68 = arith.constant 1.000000e+00 : f32
    %283 = vector.broadcast %cst_68 : f32 to vector<8x32xf32>
    %284 = arith.addf %283, %282 : vector<8x32xf32>
    %285 = arith.divf %283, %284 : vector<8x32xf32>
    %286 = arith.mulf %277, %263 : vector<8x32xf32>
    %287 = arith.mulf %276, %279 : vector<8x32xf32>
    %288 = arith.addf %286, %287 : vector<8x32xf32>
    %289 = math.tanh %288 : vector<8x32xf32>
    %290 = arith.mulf %285, %289 : vector<8x32xf32>
    %291 = vector.extract_strided_slice %213 {offsets = [24, 0], sizes = [8, 128], strides = [1, 1]} : vector<64x128xf32> to vector<8x128xf32>
    %c0_69 = arith.constant 0 : index
    %c0_70 = arith.constant 0 : index
    %292 = vector.load %arg5[%c0_69, %c0_70] : memref<32x128xf32, #tpu.memory_space<vmem>>, vector<32x128xf32>
    %cst_71 = arith.constant dense<0.000000e+00> : vector<8x128xf32>
    %293 = tpu.matmul %290, %292, %cst_71 {dimension_numbers = #tpu.dot_dimension_numbers<[1], [0], [0], [1], [0, 0, 1, 1], [], []>} : vector<8x32xf32>, vector<32x128xf32>, vector<8x128xf32> -> vector<8x128xf32>
    %294 = arith.addf %291, %293 : vector<8x128xf32>
    %295 = vector.extract_strided_slice %294 {offsets = [0, 0], sizes = [8, 64], strides = [1, 1]} : vector<8x128xf32> to vector<8x64xf32>
    %296 = arith.negf %295 : vector<8x64xf32>
    %297 = math.exp %296 : vector<8x64xf32>
    %cst_72 = arith.constant 1.000000e+00 : f32
    %298 = vector.broadcast %cst_72 : f32 to vector<8x64xf32>
    %299 = arith.addf %298, %297 : vector<8x64xf32>
    %300 = arith.divf %298, %299 : vector<8x64xf32>
    %301 = vector.extract_strided_slice %300 {offsets = [0, 0], sizes = [8, 32], strides = [1, 1]} : vector<8x64xf32> to vector<8x32xf32>
    %302 = vector.extract_strided_slice %300 {offsets = [0, 32], sizes = [8, 32], strides = [1, 1]} : vector<8x64xf32> to vector<8x32xf32>
    %303 = vector.extract_strided_slice %294 {offsets = [0, 64], sizes = [8, 32], strides = [1, 1]} : vector<8x128xf32> to vector<8x32xf32>
    %304 = math.tanh %303 : vector<8x32xf32>
    %305 = vector.extract_strided_slice %294 {offsets = [0, 96], sizes = [8, 32], strides = [1, 1]} : vector<8x128xf32> to vector<8x32xf32>
    %306 = arith.negf %305 : vector<8x32xf32>
    %307 = math.exp %306 : vector<8x32xf32>
    %cst_73 = arith.constant 1.000000e+00 : f32
    %308 = vector.broadcast %cst_73 : f32 to vector<8x32xf32>
    %309 = arith.addf %308, %307 : vector<8x32xf32>
    %310 = arith.divf %308, %309 : vector<8x32xf32>
    %311 = arith.mulf %302, %288 : vector<8x32xf32>
    %312 = arith.mulf %301, %304 : vector<8x32xf32>
    %313 = arith.addf %311, %312 : vector<8x32xf32>
    %314 = math.tanh %313 : vector<8x32xf32>
    %315 = arith.mulf %310, %314 : vector<8x32xf32>
    %316 = vector.extract_strided_slice %213 {offsets = [32, 0], sizes = [8, 128], strides = [1, 1]} : vector<64x128xf32> to vector<8x128xf32>
    %c0_74 = arith.constant 0 : index
    %c0_75 = arith.constant 0 : index
    %317 = vector.load %arg5[%c0_74, %c0_75] : memref<32x128xf32, #tpu.memory_space<vmem>>, vector<32x128xf32>
    %cst_76 = arith.constant dense<0.000000e+00> : vector<8x128xf32>
    %318 = tpu.matmul %315, %317, %cst_76 {dimension_numbers = #tpu.dot_dimension_numbers<[1], [0], [0], [1], [0, 0, 1, 1], [], []>} : vector<8x32xf32>, vector<32x128xf32>, vector<8x128xf32> -> vector<8x128xf32>
    %319 = arith.addf %316, %318 : vector<8x128xf32>
    %320 = vector.extract_strided_slice %319 {offsets = [0, 0], sizes = [8, 64], strides = [1, 1]} : vector<8x128xf32> to vector<8x64xf32>
    %321 = arith.negf %320 : vector<8x64xf32>
    %322 = math.exp %321 : vector<8x64xf32>
    %cst_77 = arith.constant 1.000000e+00 : f32
    %323 = vector.broadcast %cst_77 : f32 to vector<8x64xf32>
    %324 = arith.addf %323, %322 : vector<8x64xf32>
    %325 = arith.divf %323, %324 : vector<8x64xf32>
    %326 = vector.extract_strided_slice %325 {offsets = [0, 0], sizes = [8, 32], strides = [1, 1]} : vector<8x64xf32> to vector<8x32xf32>
    %327 = vector.extract_strided_slice %325 {offsets = [0, 32], sizes = [8, 32], strides = [1, 1]} : vector<8x64xf32> to vector<8x32xf32>
    %328 = vector.extract_strided_slice %319 {offsets = [0, 64], sizes = [8, 32], strides = [1, 1]} : vector<8x128xf32> to vector<8x32xf32>
    %329 = math.tanh %328 : vector<8x32xf32>
    %330 = vector.extract_strided_slice %319 {offsets = [0, 96], sizes = [8, 32], strides = [1, 1]} : vector<8x128xf32> to vector<8x32xf32>
    %331 = arith.negf %330 : vector<8x32xf32>
    %332 = math.exp %331 : vector<8x32xf32>
    %cst_78 = arith.constant 1.000000e+00 : f32
    %333 = vector.broadcast %cst_78 : f32 to vector<8x32xf32>
    %334 = arith.addf %333, %332 : vector<8x32xf32>
    %335 = arith.divf %333, %334 : vector<8x32xf32>
    %336 = arith.mulf %327, %313 : vector<8x32xf32>
    %337 = arith.mulf %326, %329 : vector<8x32xf32>
    %338 = arith.addf %336, %337 : vector<8x32xf32>
    %339 = math.tanh %338 : vector<8x32xf32>
    %340 = arith.mulf %335, %339 : vector<8x32xf32>
    %341 = vector.extract_strided_slice %213 {offsets = [40, 0], sizes = [8, 128], strides = [1, 1]} : vector<64x128xf32> to vector<8x128xf32>
    %c0_79 = arith.constant 0 : index
    %c0_80 = arith.constant 0 : index
    %342 = vector.load %arg5[%c0_79, %c0_80] : memref<32x128xf32, #tpu.memory_space<vmem>>, vector<32x128xf32>
    %cst_81 = arith.constant dense<0.000000e+00> : vector<8x128xf32>
    %343 = tpu.matmul %340, %342, %cst_81 {dimension_numbers = #tpu.dot_dimension_numbers<[1], [0], [0], [1], [0, 0, 1, 1], [], []>} : vector<8x32xf32>, vector<32x128xf32>, vector<8x128xf32> -> vector<8x128xf32>
    %344 = arith.addf %341, %343 : vector<8x128xf32>
    %345 = vector.extract_strided_slice %344 {offsets = [0, 0], sizes = [8, 64], strides = [1, 1]} : vector<8x128xf32> to vector<8x64xf32>
    %346 = arith.negf %345 : vector<8x64xf32>
    %347 = math.exp %346 : vector<8x64xf32>
    %cst_82 = arith.constant 1.000000e+00 : f32
    %348 = vector.broadcast %cst_82 : f32 to vector<8x64xf32>
    %349 = arith.addf %348, %347 : vector<8x64xf32>
    %350 = arith.divf %348, %349 : vector<8x64xf32>
    %351 = vector.extract_strided_slice %350 {offsets = [0, 0], sizes = [8, 32], strides = [1, 1]} : vector<8x64xf32> to vector<8x32xf32>
    %352 = vector.extract_strided_slice %350 {offsets = [0, 32], sizes = [8, 32], strides = [1, 1]} : vector<8x64xf32> to vector<8x32xf32>
    %353 = vector.extract_strided_slice %344 {offsets = [0, 64], sizes = [8, 32], strides = [1, 1]} : vector<8x128xf32> to vector<8x32xf32>
    %354 = math.tanh %353 : vector<8x32xf32>
    %355 = vector.extract_strided_slice %344 {offsets = [0, 96], sizes = [8, 32], strides = [1, 1]} : vector<8x128xf32> to vector<8x32xf32>
    %356 = arith.negf %355 : vector<8x32xf32>
    %357 = math.exp %356 : vector<8x32xf32>
    %cst_83 = arith.constant 1.000000e+00 : f32
    %358 = vector.broadcast %cst_83 : f32 to vector<8x32xf32>
    %359 = arith.addf %358, %357 : vector<8x32xf32>
    %360 = arith.divf %358, %359 : vector<8x32xf32>
    %361 = arith.mulf %352, %338 : vector<8x32xf32>
    %362 = arith.mulf %351, %354 : vector<8x32xf32>
    %363 = arith.addf %361, %362 : vector<8x32xf32>
    %364 = math.tanh %363 : vector<8x32xf32>
    %365 = arith.mulf %360, %364 : vector<8x32xf32>
    %366 = vector.extract_strided_slice %213 {offsets = [48, 0], sizes = [8, 128], strides = [1, 1]} : vector<64x128xf32> to vector<8x128xf32>
    %c0_84 = arith.constant 0 : index
    %c0_85 = arith.constant 0 : index
    %367 = vector.load %arg5[%c0_84, %c0_85] : memref<32x128xf32, #tpu.memory_space<vmem>>, vector<32x128xf32>
    %cst_86 = arith.constant dense<0.000000e+00> : vector<8x128xf32>
    %368 = tpu.matmul %365, %367, %cst_86 {dimension_numbers = #tpu.dot_dimension_numbers<[1], [0], [0], [1], [0, 0, 1, 1], [], []>} : vector<8x32xf32>, vector<32x128xf32>, vector<8x128xf32> -> vector<8x128xf32>
    %369 = arith.addf %366, %368 : vector<8x128xf32>
    %370 = vector.extract_strided_slice %369 {offsets = [0, 0], sizes = [8, 64], strides = [1, 1]} : vector<8x128xf32> to vector<8x64xf32>
    %371 = arith.negf %370 : vector<8x64xf32>
    %372 = math.exp %371 : vector<8x64xf32>
    %cst_87 = arith.constant 1.000000e+00 : f32
    %373 = vector.broadcast %cst_87 : f32 to vector<8x64xf32>
    %374 = arith.addf %373, %372 : vector<8x64xf32>
    %375 = arith.divf %373, %374 : vector<8x64xf32>
    %376 = vector.extract_strided_slice %375 {offsets = [0, 0], sizes = [8, 32], strides = [1, 1]} : vector<8x64xf32> to vector<8x32xf32>
    %377 = vector.extract_strided_slice %375 {offsets = [0, 32], sizes = [8, 32], strides = [1, 1]} : vector<8x64xf32> to vector<8x32xf32>
    %378 = vector.extract_strided_slice %369 {offsets = [0, 64], sizes = [8, 32], strides = [1, 1]} : vector<8x128xf32> to vector<8x32xf32>
    %379 = math.tanh %378 : vector<8x32xf32>
    %380 = vector.extract_strided_slice %369 {offsets = [0, 96], sizes = [8, 32], strides = [1, 1]} : vector<8x128xf32> to vector<8x32xf32>
    %381 = arith.negf %380 : vector<8x32xf32>
    %382 = math.exp %381 : vector<8x32xf32>
    %cst_88 = arith.constant 1.000000e+00 : f32
    %383 = vector.broadcast %cst_88 : f32 to vector<8x32xf32>
    %384 = arith.addf %383, %382 : vector<8x32xf32>
    %385 = arith.divf %383, %384 : vector<8x32xf32>
    %386 = arith.mulf %377, %363 : vector<8x32xf32>
    %387 = arith.mulf %376, %379 : vector<8x32xf32>
    %388 = arith.addf %386, %387 : vector<8x32xf32>
    %389 = math.tanh %388 : vector<8x32xf32>
    %390 = arith.mulf %385, %389 : vector<8x32xf32>
    %391 = vector.extract_strided_slice %213 {offsets = [56, 0], sizes = [8, 128], strides = [1, 1]} : vector<64x128xf32> to vector<8x128xf32>
    %c0_89 = arith.constant 0 : index
    %c0_90 = arith.constant 0 : index
    %392 = vector.load %arg5[%c0_89, %c0_90] : memref<32x128xf32, #tpu.memory_space<vmem>>, vector<32x128xf32>
    %cst_91 = arith.constant dense<0.000000e+00> : vector<8x128xf32>
    %393 = tpu.matmul %390, %392, %cst_91 {dimension_numbers = #tpu.dot_dimension_numbers<[1], [0], [0], [1], [0, 0, 1, 1], [], []>} : vector<8x32xf32>, vector<32x128xf32>, vector<8x128xf32> -> vector<8x128xf32>
    %394 = arith.addf %391, %393 : vector<8x128xf32>
    %395 = vector.extract_strided_slice %394 {offsets = [0, 0], sizes = [8, 64], strides = [1, 1]} : vector<8x128xf32> to vector<8x64xf32>
    %396 = arith.negf %395 : vector<8x64xf32>
    %397 = math.exp %396 : vector<8x64xf32>
    %cst_92 = arith.constant 1.000000e+00 : f32
    %398 = vector.broadcast %cst_92 : f32 to vector<8x64xf32>
    %399 = arith.addf %398, %397 : vector<8x64xf32>
    %400 = arith.divf %398, %399 : vector<8x64xf32>
    %401 = vector.extract_strided_slice %400 {offsets = [0, 0], sizes = [8, 32], strides = [1, 1]} : vector<8x64xf32> to vector<8x32xf32>
    %402 = vector.extract_strided_slice %400 {offsets = [0, 32], sizes = [8, 32], strides = [1, 1]} : vector<8x64xf32> to vector<8x32xf32>
    %403 = vector.extract_strided_slice %394 {offsets = [0, 64], sizes = [8, 32], strides = [1, 1]} : vector<8x128xf32> to vector<8x32xf32>
    %404 = math.tanh %403 : vector<8x32xf32>
    %405 = vector.extract_strided_slice %394 {offsets = [0, 96], sizes = [8, 32], strides = [1, 1]} : vector<8x128xf32> to vector<8x32xf32>
    %406 = arith.negf %405 : vector<8x32xf32>
    %407 = math.exp %406 : vector<8x32xf32>
    %cst_93 = arith.constant 1.000000e+00 : f32
    %408 = vector.broadcast %cst_93 : f32 to vector<8x32xf32>
    %409 = arith.addf %408, %407 : vector<8x32xf32>
    %410 = arith.divf %408, %409 : vector<8x32xf32>
    %411 = arith.mulf %402, %388 : vector<8x32xf32>
    %412 = arith.mulf %401, %404 : vector<8x32xf32>
    %413 = arith.addf %411, %412 : vector<8x32xf32>
    %414 = math.tanh %413 : vector<8x32xf32>
    %415 = arith.mulf %410, %414 : vector<8x32xf32>
    %416 = tpu.concatenate %207, %415 in 1 : vector<8x32xf32>, vector<8x32xf32> -> vector<8x64xf32>
    %c0_94 = arith.constant 0 : index
    %c0_95 = arith.constant 0 : index
    %417 = vector.load %arg7[%c0_94, %c0_95] : memref<64x5xf32, #tpu.memory_space<vmem>>, vector<64x5xf32>
    %cst_96 = arith.constant dense<0.000000e+00> : vector<8x5xf32>
    %418 = tpu.matmul %416, %417, %cst_96 {dimension_numbers = #tpu.dot_dimension_numbers<[1], [0], [0], [1], [0, 0, 1, 1], [], []>} : vector<8x64xf32>, vector<64x5xf32>, vector<8x5xf32> -> vector<8x5xf32>
    %c0_97 = arith.constant 0 : index
    %c0_98 = arith.constant 0 : index
    %419 = vector.load %arg8[%c0_97, %c0_98] : memref<1x5xf32, #tpu.memory_space<vmem>>, vector<1x5xf32>
    %420 = vector.broadcast %419 : vector<1x5xf32> to vector<8x5xf32>
    %421 = arith.addf %418, %420 : vector<8x5xf32>
    %c0_99 = arith.constant 0 : index
    %c0_100 = arith.constant 0 : index
    %422 = vector.load %arg9[%c0_99, %c0_100] : memref<8x5xf32, #tpu.memory_space<vmem>>, vector<8x5xf32>
    tpu.vector_store %arg9[%c0_99, %c0_100], %421 {strides = array<i32>} : memref<8x5xf32, #tpu.memory_space<vmem>>, vector<8x5xf32>,
    return
  }
}

</mosaic_0001>

<bundles_post_ra>
// kernel: classification_lstm_forward.1
= control target key start
LH: loop header
LB: loop body
LE: loop exit
PB: predicated region body
PF: predicated region fallthrough
CT: control target
= control target key end

     0   :  { %vm52_vm0 = vcmask 261120   ;;  %s3156_s0 = inlined_call_operand.vmem [shape: f32[64,32], index: 0, kind: input, shape index: {}]   ;;  %s3157_s1 = inlined_call_operand.vmem [shape: f32[32,128], index: 1, kind: input, shape index: {}]   ;;  %s3158_s2 = inlined_call_operand.vmem [shape: f32[32,128], index: 2, kind: input, shape index: {}]   ;;  %s3159_s3 = inlined_call_operand.vmem [shape: f32[1,128], index: 3, kind: input, shape index: {}]   ;;  %s3160_s4 = inlined_call_operand.vmem [shape: f32[32,128], index: 4, kind: input, shape index: {}]   ;;  %s3161_s5 = inlined_call_operand.vmem [shape: f32[32,128], index: 5, kind: input, shape index: {}]   ;;  %s3162_s6 = inlined_call_operand.vmem [shape: f32[1,128], index: 6, kind: input, shape index: {}]   ;;  %s3163_s7 = inlined_call_operand.vmem [shape: f32[64,5], index: 7, kind: input, shape index: {}]   ;;  %s3164_s8 = inlined_call_operand.vmem [shape: f32[1,5], index: 8, kind: input, shape index: {}]   ;;  %s3165_s9 = inlined_call_operand.hbm [shape: f32[8,5], index: 9, kind: output, shape index: {}]  }
   0x1   :  { %v41_v0 = vld [vmem:[%s3157_s1] sm:$0xff]  ;;  %v42_v1 = vld [vmem:[%s3157_s1 + $0x8] sm:$0xff]  ;;  %v43_v2 = vld [vmem:[%s3157_s1 + $0x10] sm:$0xff] }
   0x2   :  { %v2413_v3 = vpack.c.bf16 %v42_v1, %v41_v0  ;;  %v44_v4 = vld [vmem:[%s3157_s1 + $0x18] sm:$0xff]  ;;  %v37_v5 = vld [vmem:[%s3156_s0 + $0x20] sm:$0xff]  ;;  %v183_v9 = vld [vmem:[%s3158_s2 + $0x8] sm:$0xff] }
   0x3   :  { %v2417_v6 = vpack.c.bf16 %v44_v4, %v43_v2  ;;  %2192 = vmatprep.mubr.msk.f32.mxu1 %vm52_vm0, %v37_v5  ;;  %v33_v7 = vld [vmem:[%s3156_s0] sm:$0xff] }
   0x4   :  { %2537 = vmatprep.subr.bf16.mxu1 %v2413_v3  ;;  %2414 = vmatprep.subr.bf16.mxu0 %v2413_v3  ;;  %v182_v8 = vld [vmem:[%s3158_s2] sm:$0xff] }
   0x5   :  { %2539 = vmatpush3.bf16.msra.mxu1 %v2413_v3  ;;  %2416 = vmatpush3.bf16.msra.mxu0 %v2413_v3 }
   0x6   :  { %2538 = vmatprep.subr.bf16.mxu1 %v2417_v6  ;;  %2418 = vmatprep.subr.bf16.mxu0 %v2417_v6 }
   0x7   :  { %14 = vsyncpa [#allocation3], 0  ;;  %2186 = vmatprep.mubr.msk.f32.mxu0 %vm52_vm0, %v33_v7  ;;  %v38_v10 = vld [vmem:[%s3156_s0 + $0x28] sm:$0xff]  ;;  %v2784_v11 = vpack.c.bf16 %v183_v9, %v182_v8  ;;  %v2699_v13 = vmov 0.0|0.0   ;;  %v39_v14 = vld [vmem:[%s3156_s0 + $0x30] sm:$0xff]  ;;  %vm2700_vm1 = vmmov 0  }
   0x8   :  { %v34_v12 = vld [vmem:[%s3156_s0 + $0x8] sm:$0xff]  ;;  %v184_v15 = vld [vmem:[%s3158_s2 + $0x10] sm:$0xff]  ;;  %v185_v16 = vld [vmem:[%s3158_s2 + $0x18] sm:$0xff]  ;;  %v2701_v19 = vmov 0.0   ;;  %s2702_s16 = smov 64   ;;  %vm1925_vm2 = vcmask 523264  }
   0x9   :  { %2540 = vmatpush3.bf16.msra.mxu1 %v2417_v6  ;;  %2420 = vmatpush3.bf16.msra.mxu0 %v2417_v6  ;;  %v40_v17 = vld [vmem:[%s3156_s0 + $0x38] sm:$0xff]  ;;  %v2807_v18 = vpack.c.bf16 %v185_v16, %v184_v15  ;;  %v2833_v24 = vld [vmem:[%s3159_s3] ss:$0 sm:$0xff]  ;;  %s2703_s3 = smov 32   ;;  %v35_v59 = vld [vmem:[%s3156_s0 + $0x10] sm:$0xff]  ;;  %vm1999_vm3 = vcmask 39936  }
   0xa   :  { %2421 = vmatprep.subr.bf16.mxu1 %v2699_v13  ;;  %2433 = vmatprep.subr.bf16.mxu0 %v2699_v13  ;;  %v36_v60 = vld [vmem:[%s3156_s0 + $0x18] sm:$0xff] }
   0xc   :  { %2193 = vmatmul.mubr.msk.f32.vlgmr.msra.gmra.mrb[0].mxu1 %vm52_vm0, %v38_v10  ;;  %2187 = vmatmul.mubr.msk.f32.vlgmr.msra.gmra.mrb[0].mxu0 %vm52_vm0, %v34_v12 }
   0xd   :  { %2423 = vmatpush3.bf16.msra.mxu1 %v2784_v11  ;;  %2195 = vmatprep.mubr.msk.f32.mxu1 %vm52_vm0, %v39_v14 }
   0xe   :  { %2424 = vmatprep.subr.bf16.mxu1 %v2699_v13  ;;  %2435 = vmatpush3.bf16.msra.mxu0 %v2784_v11 }
   0xf   :  { %2436 = vmatprep.subr.bf16.mxu0 %v2699_v13  ;;  %2189 = vmatprep.mubr.msk.f32.mxu0 %vm52_vm0, %v35_v59 }
  0x10   :  { %2196 = vmatmul.mubr.msk.f32.gmra.mrb[2].mxu1 %vm52_vm0, %v40_v17  ;;  %2190 = vmatmul.mubr.msk.f32.gmra.mrb[2].mxu0 %vm52_vm0, %v36_v60 }
  0x11   :  { %2426 = vmatpush3.bf16.msra.mxu1 %v2807_v18  ;;  %2206 = vmatprep.mubr.msk.f32.mxu1 %vm2700_vm1, %v2701_v19 }
  0x12   :  { %2427 = vmatprep.subr.bf16.mxu1 %v2699_v13  ;;  %2438 = vmatpush3.bf16.msra.mxu0 %v2807_v18 }
  0x13   :  { %2445 = vmatprep.subr.bf16.mxu0 %v2699_v13  ;;  %2228 = vmatprep.mubr.msk.f32.mxu0 %vm2700_vm1, %v2701_v19 }
  0x14   :  { %2207 = vmatmul.mubr.f32.vlgmr.msra.gmra.mrb[4].mxu1 %v2701_v19 }
  0x15   :  { %2429 = vmatpush3.bf16.msra.mxu1 %v2784_v11  ;;  %2217 = vmatprep.mubr.msk.f32.mxu1 %vm2700_vm1, %v2701_v19 }
  0x16   :  { %2430 = vmatprep.subr.bf16.mxu1 %v2699_v13 }
  0x19   :  { %2432 = vmatpush3.bf16.msra.mxu1 %v2807_v18 }
  0x1a   :  { %2439 = vmatprep.subr.bf16.mxu1 %v2699_v13 }
  0xdf   :  { %v2826_v20 = vpop.f32.mrb[0].mxu1  ;;  %v2188_v21 = vpop.f32.mrb[0].mxu0 }
  0xe0   :  { %v2828_v22 = vpop.f32.mrb[1].mxu1  ;;  %v143_v23 = vpop.f32.mrb[1].mxu0  ;;  %v149_v45 = vadd.f32 %v2188_v21, %v2833_v24 }
  0xe1   :  { %v144_v27 = vadd.f32 %v2833_v24, %v143_v23 }
  0xe3   :  { %v2835_v25 = vpop.f32.mrb[2].mxu1  ;;  %v2191_v0 = vpop.f32.mrb[2].mxu0 }
  0xe4   :  { %v2837_v26 = vpop.f32.mrb[3].mxu1  ;;  %v153_v1 = vpop.f32.mrb[3].mxu0 }
  0xe5   :  { %v154_v3 = vadd.f32 %v2833_v24, %v153_v1 }
  0xe7   :  { %v255_v28 = vpop.f32.mrb[4].mxu1 }
  0xe8   :  { %v259_v29 = vadd.f32 %v255_v28, %v144_v27  ;;  %v2208_v30 = vpop.f32.mrb[5].mxu1 }
  0xe9   :  { %v159_v30 = vadd.f32 %v2191_v0, %v2833_v24 }
  0xea   :  { %2547 = vtanh.f32 %v259_v29  ;;  %v2024_v32 = vmul.f32 -1.442695, %v259_v29 }
  0xec   :  { %2549 = vpow2.f32 %v2024_v32 }
  0xf4   :  { %v2548_v31 = vpop.eup %2547 }
  0xf5   :  { %269 = vrot.lane.b32.xlu0 %v2548_v31, %s2702_s16 }
  0xf6   :  { %v2550_v33 = vpop.eup %2549 }
  0xf7   :  { %v263_v34 = vadd.f32 1.0, %v2550_v33 }
  0xf9   :  { %2551 = vrcp.f32 %v263_v34 }
 0x103   :  { %v2552_v35 = vpop.eup %2551 }
 0x104   :  { %v267_v38 = vmul.f32 0.0, %v2552_v35 }
 0x167   :  { %v270_v36 = vpop.permute.xlu0 %269 }
 0x168   :  { %v272_v37 = vmul.f32 %v2552_v35, %v270_v36 }
 0x16a   :  { %274 = vrot.lane.b32.xlu0 %v272_v37, %s2703_s3 }
 0x1dc   :  { %v275_v39 = vpop.permute.xlu0 %274 }
 0x1dd   :  { %v277_v40 = vadd.f32 %v275_v39, %v267_v38 }
 0x1df   :  { %2553 = vtanh.f32 %v277_v40 }
 0x1e9   :  { %v2554_v41 = vpop.eup %2553 }
 0x1ea   :  { %280 = vrot.lane.b32.xlu1 %v2554_v41, %s2702_s16 }
 0x25c   :  { %v281_v42 = vpop.permute.xlu1 %280 }
 0x25d   :  { %v283_v43 = vmul.f32 %v2552_v35, %v281_v42 }
 0x25f   :  { %285 = vrot.lane.b32.xlu1 %v283_v43, %s2703_s3 }
 0x2d1   :  { %v2844_v44 = vpop.permute.xlu1 %285 }
 0x2d2   :  { %2218 = vmatmul.mubr.msk.f32.vlgmr.msra.gmra.mrb[6].mxu1 %vm52_vm0, %v2844_v44 }
 0x2d3   :  { %2441 = vmatpush3.bf16.msra.mxu1 %v2784_v11  ;;  %2239 = vmatprep.mubr.msk.f32.mxu1 %vm2700_vm1, %v2701_v19 }
 0x2d4   :  { %2442 = vmatprep.subr.bf16.mxu1 %v2699_v13 }
 0x2d7   :  { %2444 = vmatpush3.bf16.msra.mxu1 %v2807_v18 }
 0x2d8   :  { %2451 = vmatprep.subr.bf16.mxu1 %v2699_v13 }
 0x3a5   :  { %v355_v46 = vpop.f32.mrb[6].mxu1 }
 0x3a6   :  { %v359_v47 = vadd.f32 %v355_v46, %v149_v45  ;;  %v2219_v48 = vpop.f32.mrb[7].mxu1 }
 0x3a8   :  { %2555 = vtanh.f32 %v359_v47  ;;  %v2026_v50 = vmul.f32 -1.442695, %v359_v47 }
 0x3aa   :  { %2557 = vpow2.f32 %v2026_v50 }
 0x3b2   :  { %v2556_v49 = vpop.eup %2555 }
 0x3b3   :  { %369 = vrot.lane.b32.xlu0 %v2556_v49, %s2702_s16  ;;  %v164_v49 = vadd.f32 %v2833_v24, %v2828_v22 }
 0x3b4   :  { %v2558_v51 = vpop.eup %2557 }
 0x3b5   :  { %v363_v52 = vadd.f32 1.0, %v2558_v51 }
 0x3b7   :  { %2559 = vrcp.f32 %v363_v52 }
 0x3c1   :  { %v2560_v53 = vpop.eup %2559 }
 0x3c2   :  { %v367_v56 = vmul.f32 %v2560_v53, %v277_v40 }
 0x425   :  { %v370_v54 = vpop.permute.xlu0 %369 }
 0x426   :  { %v372_v55 = vmul.f32 %v2560_v53, %v370_v54 }
 0x428   :  { %374 = vrot.lane.b32.xlu1 %v372_v55, %s2703_s3 }
 0x49a   :  { %v375_v57 = vpop.permute.xlu1 %374 }
 0x49b   :  { %v377_v58 = vadd.f32 %v375_v57, %v367_v56 }
 0x49d   :  { %2561 = vtanh.f32 %v377_v58 }
 0x4a7   :  { %v2562_v61 = vpop.eup %2561 }
 0x4a8   :  { %380 = vrot.lane.b32.xlu0 %v2562_v61, %s2702_s16 }
 0x51a   :  { %v381_v62 = vpop.permute.xlu0 %380 }
 0x51b   :  { %v383_v63 = vmul.f32 %v2560_v53, %v381_v62 }
 0x51d   :  { %385 = vrot.lane.b32.xlu1 %v383_v63, %s2703_s3 }
 0x58f   :  { %v2869_v2 = vpop.permute.xlu1 %385 }
 0x590   :  { %2229 = vmatmul.mubr.msk.f32.vlgmr.msra.gmra.mrb[4].mxu0 %vm52_vm0, %v2869_v2 }
 0x591   :  { %2447 = vmatpush3.bf16.msra.mxu0 %v2784_v11  ;;  %2250 = vmatprep.mubr.msk.f32.mxu0 %vm2700_vm1, %v2701_v19 }
 0x592   :  { %2448 = vmatprep.subr.bf16.mxu0 %v2699_v13 }
 0x595   :  { %2450 = vmatpush3.bf16.msra.mxu0 %v2807_v18 }
 0x596   :  { %2457 = vmatprep.subr.bf16.mxu0 %v2699_v13 }
 0x663   :  { %v455_v4 = vpop.f32.mrb[4].mxu0 }
 0x664   :  { %v459_v5 = vadd.f32 %v455_v4, %v154_v3  ;;  %v2230_v6 = vpop.f32.mrb[5].mxu0  ;;  %v169_v3 = vadd.f32 %v2826_v20, %v2833_v24 }
 0x666   :  { %2563 = vtanh.f32 %v459_v5  ;;  %v2028_v8 = vmul.f32 -1.442695, %v459_v5 }
 0x668   :  { %2565 = vpow2.f32 %v2028_v8 }
 0x670   :  { %v2564_v7 = vpop.eup %2563 }
 0x671   :  { %469 = vrot.lane.b32.xlu0 %v2564_v7, %s2702_s16 }
 0x672   :  { %v2566_v9 = vpop.eup %2565 }
 0x673   :  { %v463_v10 = vadd.f32 1.0, %v2566_v9 }
 0x675   :  { %2567 = vrcp.f32 %v463_v10 }
 0x67f   :  { %v2568_v12 = vpop.eup %2567 }
 0x680   :  { %v467_v16 = vmul.f32 %v2568_v12, %v377_v58 }
 0x6e3   :  { %v470_v14 = vpop.permute.xlu0 %469 }
 0x6e4   :  { %v472_v15 = vmul.f32 %v2568_v12, %v470_v14 }
 0x6e6   :  { %474 = vrot.lane.b32.xlu1 %v472_v15, %s2703_s3 }
 0x758   :  { %v475_v17 = vpop.permute.xlu1 %474 }
 0x759   :  { %v477_v21 = vadd.f32 %v475_v17, %v467_v16  ;;  %v984_v16 = vld [vmem:[%s3160_s4] sm:$0xff]  ;;  %v985_v17 = vld [vmem:[%s3160_s4 + $0x8] sm:$0xff] }
 0x75b   :  { %2569 = vtanh.f32 %v477_v21 }
 0x765   :  { %v2570_v23 = vpop.eup %2569 }
 0x766   :  { %480 = vrot.lane.b32.xlu0 %v2570_v23, %s2702_s16 }
 0x7d8   :  { %v481_v27 = vpop.permute.xlu0 %480 }
 0x7d9   :  { %v483_v28 = vmul.f32 %v2568_v12, %v481_v27 }
 0x7db   :  { %485 = vrot.lane.b32.xlu1 %v483_v28, %s2703_s3 }
 0x84d   :  { %v2884_v29 = vpop.permute.xlu1 %485 }
 0x84e   :  { %2240 = vmatmul.mubr.msk.f32.vlgmr.msra.gmra.mrb[8].mxu1 %vm52_vm0, %v2884_v29 }
 0x84f   :  { %2453 = vmatpush3.bf16.msra.mxu1 %v2784_v11  ;;  %2261 = vmatprep.mubr.msk.f32.mxu1 %vm2700_vm1, %v2701_v19 }
 0x850   :  { %2454 = vmatprep.subr.bf16.mxu1 %v2699_v13 }
 0x853   :  { %2456 = vmatpush3.bf16.msra.mxu1 %v2807_v18 }
 0x854   :  { %2463 = vmatprep.subr.bf16.mxu1 %v2699_v13 }
 0x921   :  { %v555_v31 = vpop.f32.mrb[8].mxu1 }
 0x922   :  { %v559_v32 = vadd.f32 %v555_v31, %v159_v30  ;;  %v2241_v33 = vpop.f32.mrb[9].mxu1  ;;  %v986_v30 = vld [vmem:[%s3160_s4 + $0x10] sm:$0xff]  ;;  %v987_v31 = vld [vmem:[%s3160_s4 + $0x18] sm:$0xff]  ;;  %s2704_s4 = smov [#allocation2]  }
 0x923   :  { %s2007_s27 = sshll.u32 %s2704_s4, 4  ;;  %s2008_s27 = int_to_ptr.vmem [resolvable:$true] %s2007_s27 }
 0x924   :  { %2571 = vtanh.f32 %v559_v32  ;;  %v2030_v35 = vmul.f32 -1.442695, %v559_v32  ;;  %v2473_v32 = vpack.c.bf16 %v987_v31, %v986_v30  ;;  %s2675_s28 = scalar_lea.vmem %s2008_s27, 128  ;;  %p2680_p1 = scmp.lt.s32.totalorder %s2008_s27, %s2008_s27 }
 0x925   :  { %p2676_p0 = scmp.ne.s32.totalorder %s2008_s27, %s2675_s28  ;;  %p2681_p2 = scmp.lt.s32.totalorder %s2675_s28, %s2675_s28 }
 0x926   :  { %2573 = vpow2.f32 %v2030_v35 }
 0x927   :  { %p2682_p3 = por %p2681_p2, %p2680_p1 }
 0x929   :  { %p2683_p4 = pnand %p2682_p3, %p2676_p0 }
 0x92e   :  { %v2572_v34 = vpop.eup %2571 }
 0x92f   :  { %569 = vrot.lane.b32.xlu0 %v2572_v34, %s2702_s16 }
 0x930   :  { %v2574_v36 = vpop.eup %2573 }
 0x931   :  { %v563_v37 = vadd.f32 1.0, %v2574_v36 }
 0x933   :  { %2575 = vrcp.f32 %v563_v37 }
 0x93d   :  { %v2576_v38 = vpop.eup %2575 }
 0x93e   :  { %v567_v41 = vmul.f32 %v2576_v38, %v477_v21  ;;  %v2469_v21 = vpack.c.bf16 %v985_v17, %v984_v16 }
 0x9a1   :  { %v570_v39 = vpop.permute.xlu0 %569 }
 0x9a2   :  { %v572_v40 = vmul.f32 %v2576_v38, %v570_v39 }
 0x9a4   :  { %574 = vrot.lane.b32.xlu1 %v572_v40, %s2703_s3 }
 0xa16   :  { %v575_v42 = vpop.permute.xlu1 %574 }
 0xa17   :  { %v577_v43 = vadd.f32 %v575_v42, %v567_v41 }
 0xa19   :  { %2577 = vtanh.f32 %v577_v43 }
 0xa23   :  { %v2578_v45 = vpop.eup %2577 }
 0xa24   :  { %580 = vrot.lane.b32.xlu0 %v2578_v45, %s2702_s16 }
 0xa96   :  { %v581_v46 = vpop.permute.xlu0 %580 }
 0xa97   :  { %v583_v47 = vmul.f32 %v2576_v38, %v581_v46 }
 0xa99   :  { %585 = vrot.lane.b32.xlu1 %v583_v47, %s2703_s3 }
 0xb0b   :  { %v2899_v48 = vpop.permute.xlu1 %585 }
 0xb0c   :  { %2251 = vmatmul.mubr.msk.f32.vlgmr.msra.gmra.mrb[6].mxu0 %vm52_vm0, %v2899_v48 }
 0xb0d   :  { %2459 = vmatpush3.bf16.msra.mxu0 %v2784_v11  ;;  %2272 = vmatprep.mubr.msk.f32.mxu0 %vm2700_vm1, %v2701_v19 }
 0xb0e   :  { %2460 = vmatprep.subr.bf16.mxu0 %v2699_v13 }
 0xb11   :  { %2462 = vmatpush3.bf16.msra.mxu0 %v2807_v18 }
 0xb12   :  { %2470 = vmatprep.subr.bf16.mxu0 %v2469_v21 }
 0xbdf   :  { %v655_v50 = vpop.f32.mrb[6].mxu0 }
 0xbe0   :  { %v659_v51 = vadd.f32 %v655_v50, %v164_v49  ;;  %v2252_v52 = vpop.f32.mrb[7].mxu0 }
 0xbe1   :  { %v1105_v52 = vld [vmem:[%s3161_s5] sm:$0xff] }
 0xbe2   :  { %2579 = vtanh.f32 %v659_v51  ;;  %v2032_v54 = vmul.f32 -1.442695, %v659_v51 }
 0xbe4   :  { %2581 = vpow2.f32 %v2032_v54 }
 0xbec   :  { %v2580_v53 = vpop.eup %2579 }
 0xbed   :  { %669 = vrot.lane.b32.xlu0 %v2580_v53, %s2702_s16  ;;  %v1106_v53 = vld [vmem:[%s3161_s5 + $0x8] sm:$0xff] }
 0xbee   :  { %v2582_v55 = vpop.eup %2581  ;;  %v2975_v54 = vpack.c.bf16 %v1106_v53, %v1105_v52 }
 0xbef   :  { %v663_v56 = vadd.f32 1.0, %v2582_v55  ;;  %v1107_v55 = vld [vmem:[%s3161_s5 + $0x10] sm:$0xff] }
 0xbf1   :  { %2583 = vrcp.f32 %v663_v56  ;;  %v1108_v56 = vld [vmem:[%s3161_s5 + $0x18] sm:$0xff] }
 0xbfb   :  { %v2584_v57 = vpop.eup %2583 }
 0xbfc   :  { %v667_v60 = vmul.f32 %v2584_v57, %v577_v43 }
 0xc5f   :  { %v670_v58 = vpop.permute.xlu0 %669 }
 0xc60   :  { %v672_v59 = vmul.f32 %v2584_v57, %v670_v58 }
 0xc62   :  { %674 = vrot.lane.b32.xlu1 %v672_v59, %s2703_s3 }
 0xcd4   :  { %v675_v61 = vpop.permute.xlu1 %674 }
 0xcd5   :  { %v677_v22 = vadd.f32 %v675_v61, %v667_v60  ;;  %v179_v61 = vadd.f32 %v2835_v25, %v2833_v24 }
 0xcd7   :  { %2585 = vtanh.f32 %v677_v22 }
 0xce1   :  { %v2586_v62 = vpop.eup %2585 }
 0xce2   :  { %680 = vrot.lane.b32.xlu0 %v2586_v62, %s2702_s16 }
 0xd54   :  { %v681_v63 = vpop.permute.xlu0 %680 }
 0xd55   :  { %v683_v0 = vmul.f32 %v2584_v57, %v681_v63  ;;  %v2985_v57 = vpack.c.bf16 %v1108_v56, %v1107_v55 }
 0xd57   :  { %685 = vrot.lane.b32.xlu1 %v683_v0, %s2703_s3  ;;  %v3010_v0 = vld [vmem:[%s3162_s6] ss:$0 sm:$0xff] }
 0xdc9   :  { %v686_v1 = vpop.permute.xlu1 %685 }
 0xdca   :  { %2262 = vmatmul.mubr.msk.f32.vlgmr.msra.gmra.mrb[10].mxu1 %vm52_vm0, %v686_v1 }
 0xdcb   :  { %2465 = vmatpush3.bf16.msra.mxu1 %v2784_v11  ;;  %2283 = vmatprep.mubr.msk.f32.mxu1 %vm2700_vm1, %v2701_v19 }
 0xdcc   :  { %2466 = vmatprep.subr.bf16.mxu1 %v2699_v13 }
 0xdcf   :  { %2468 = vmatpush3.bf16.msra.mxu1 %v2807_v18 }
 0xdd0   :  { %2477 = vmatprep.subr.bf16.mxu1 %v2699_v13 }
 0xe9d   :  { %v755_v4 = vpop.f32.mrb[10].mxu1 }
 0xe9e   :  { %v759_v5 = vadd.f32 %v755_v4, %v169_v3  ;;  %v2263_v6 = vpop.f32.mrb[11].mxu1 }
 0xea0   :  { %2587 = vtanh.f32 %v759_v5  ;;  %v2034_v11 = vmul.f32 -1.442695, %v759_v5 }
 0xea2   :  { %2589 = vpow2.f32 %v2034_v11 }
 0xeaa   :  { %v2588_v7 = vpop.eup %2587 }
 0xeab   :  { %769 = vrot.lane.b32.xlu0 %v2588_v7, %s2702_s16 }
 0xeac   :  { %v2590_v8 = vpop.eup %2589 }
 0xead   :  { %v763_v9 = vadd.f32 1.0, %v2590_v8 }
 0xeaf   :  { %2591 = vrcp.f32 %v763_v9 }
 0xeb9   :  { %v2592_v10 = vpop.eup %2591 }
 0xeba   :  { %v767_v14 = vmul.f32 %v2592_v10, %v677_v22 }
 0xf1d   :  { %v770_v12 = vpop.permute.xlu0 %769 }
 0xf1e   :  { %v772_v18 = vmul.f32 %v2592_v10, %v770_v12 }
 0xf20   :  { %774 = vrot.lane.b32.xlu1 %v772_v18, %s2703_s3 }
 0xf92   :  { %v775_v15 = vpop.permute.xlu1 %774 }
 0xf93   :  { %v777_v20 = vadd.f32 %v775_v15, %v767_v14 }
 0xf95   :  { %2593 = vtanh.f32 %v777_v20 }
 0xf9f   :  { %v2594_v23 = vpop.eup %2593 }
 0xfa0   :  { %780 = vrot.lane.b32.xlu0 %v2594_v23, %s2702_s16 }
0x1012   :  { %v781_v27 = vpop.permute.xlu0 %780 }
0x1013   :  { %v783_v28 = vmul.f32 %v2592_v10, %v781_v27 }
0x1015   :  { %785 = vrot.lane.b32.xlu1 %v783_v28, %s2703_s3 }
0x1087   :  { %v786_v33 = vpop.permute.xlu1 %785 }
0x1088   :  { %2273 = vmatmul.mubr.msk.f32.vlgmr.msra.gmra.mrb[8].mxu0 %vm52_vm0, %v786_v33 }
0x1089   :  { %2472 = vmatpush3.bf16.msra.mxu0 %v2469_v21  ;;  %2294 = vmatprep.mubr.msk.f32.mxu0 %vm52_vm0, %v2844_v44  ;;  %v174_v44 = vadd.f32 %v2833_v24, %v2837_v26 }
0x108a   :  { %2474 = vmatprep.subr.bf16.mxu0 %v2473_v32 }
0x108d   :  { %2476 = vmatpush3.bf16.msra.mxu0 %v2473_v32 }
0x108e   :  { %2489 = vmatprep.subr.bf16.mxu0 %v2699_v13 }
0x1090   :  { %2295 = vmatmul.mubr.msk.f32.vlgmr.msra.gmra.mrb[10].mxu0 %vm52_vm0, %v2869_v2 }
0x1091   :  { %2297 = vmatprep.mubr.msk.f32.mxu0 %vm52_vm0, %v2884_v29  ;;  %2491 = vmatpush3.bf16.msra.mxu0 %v2975_v54 }
0x1092   :  { %2492 = vmatprep.subr.bf16.mxu0 %v2699_v13 }
0x1094   :  { %2298 = vmatmul.mubr.msk.f32.gmra.mrb[12].mxu0 %vm52_vm0, %v2899_v48 }
0x1095   :  { %2300 = vmatprep.mubr.msk.f32.mxu0 %vm52_vm0, %v686_v1  ;;  %2494 = vmatpush3.bf16.msra.mxu0 %v2985_v57 }
0x1096   :  { %2501 = vmatprep.subr.bf16.mxu0 %v2699_v13 }
0x1098   :  { %2301 = vmatmul.mubr.msk.f32.gmra.mrb[14].mxu0 %vm52_vm0, %v786_v33 }
0x115b   :  { %v855_v34 = vpop.f32.mrb[8].mxu0 }
0x115c   :  { %v859_v35 = vadd.f32 %v855_v34, %v174_v44  ;;  %v2274_v36 = vpop.f32.mrb[9].mxu0 }
0x115e   :  { %2595 = vtanh.f32 %v859_v35  ;;  %v2036_v42 = vmul.f32 -1.442695, %v859_v35 }
0x1160   :  { %2597 = vpow2.f32 %v2036_v42 }
0x1163   :  { %v2953_v37 = vpop.f32.mrb[10].mxu0 }
0x1164   :  { %v1066_v2 = vpop.f32.mrb[11].mxu0 }
0x1165   :  { %v1067_v1 = vadd.f32 %v3010_v0, %v1066_v2  ;;  %v1072_v2 = vadd.f32 %v2953_v37, %v3010_v0 }
0x1167   :  { %v2955_v38 = vpop.f32.mrb[12].mxu0 }
0x1168   :  { %v2596_v29 = vpop.eup %2595  ;;  %v2957_v39 = vpop.f32.mrb[13].mxu0 }
0x1169   :  { %869 = vrot.lane.b32.xlu0 %v2596_v29, %s2702_s16 }
0x116a   :  { %v2598_v26 = vpop.eup %2597 }
0x116b   :  { %v2960_v40 = vpop.f32.mrb[14].mxu0  ;;  %v863_v43 = vadd.f32 1.0, %v2598_v26 }
0x116c   :  { %v2962_v41 = vpop.f32.mrb[15].mxu0 }
0x116d   :  { %2599 = vrcp.f32 %v863_v43 }
0x1177   :  { %v2600_v45 = vpop.eup %2599 }
0x1178   :  { %v867_v48 = vmul.f32 %v2600_v45, %v777_v20 }
0x11db   :  { %v870_v46 = vpop.permute.xlu0 %869 }
0x11dc   :  { %v872_v47 = vmul.f32 %v2600_v45, %v870_v46 }
0x11de   :  { %874 = vrot.lane.b32.xlu1 %v872_v47, %s2703_s3 }
0x1250   :  { %v875_v49 = vpop.permute.xlu1 %874 }
0x1251   :  { %v2965_v50 = vadd.f32 %v875_v49, %v867_v48 }
0x1253   :  { %2601 = vtanh.f32 %v2965_v50 }
0x125d   :  { %v2602_v51 = vpop.eup %2601 }
0x125e   :  { %880 = vrot.lane.b32.xlu0 %v2602_v51, %s2702_s16 }
0x12d0   :  { %v881_v58 = vpop.permute.xlu0 %880 }
0x12d1   :  { %v883_v59 = vmul.f32 %v2600_v45, %v881_v58 }
0x12d3   :  { %885 = vrot.lane.b32.xlu1 %v883_v59, %s2703_s3 }
0x1345   :  { %v886_v60 = vpop.permute.xlu1 %885 }
0x1346   :  { %2284 = vmatmul.mubr.msk.f32.vlgmr.msra.gmra.mrb[12].mxu1 %vm52_vm0, %v886_v60  ;;  %2303 = vmatprep.mubr.msk.f32.mxu0 %vm52_vm0, %v886_v60 }
0x1347   :  { %2479 = vmatpush3.bf16.msra.mxu1 %v2975_v54  ;;  %2314 = vmatprep.mubr.msk.f32.mxu1 %vm2700_vm1, %v2701_v19 }
0x1348   :  { %2480 = vmatprep.subr.bf16.mxu1 %v2699_v13 }
0x134b   :  { %2482 = vmatpush3.bf16.msra.mxu1 %v2985_v57 }
0x134c   :  { %2483 = vmatprep.subr.bf16.mxu1 %v2699_v13 }
0x134e   :  { %2315 = vmatmul.mubr.f32.vlgmr.msra.gmra.mrb[14].mxu1 %v2701_v19 }
0x134f   :  { %2485 = vmatpush3.bf16.msra.mxu1 %v2975_v54  ;;  %2325 = vmatprep.mubr.msk.f32.mxu1 %vm2700_vm1, %v2701_v19 }
0x1350   :  { %2486 = vmatprep.subr.bf16.mxu1 %v2699_v13 }
0x1353   :  { %2488 = vmatpush3.bf16.msra.mxu1 %v2985_v57 }
0x1354   :  { %2495 = vmatprep.subr.bf16.mxu1 %v2699_v13 }
0x1419   :  { %v955_v22 = vpop.f32.mrb[12].mxu1 }
0x141a   :  { %v959_v62 = vadd.f32 %v955_v22, %v179_v61  ;;  %v2285_v63 = vpop.f32.mrb[13].mxu1  ;;  %v1077_v22 = vadd.f32 %v3010_v0, %v2957_v39 }
0x141c   :  { %v2038_v20 = vmul.f32 -1.442695, %v959_v62 }
0x1421   :  { %v1175_v3 = vpop.f32.mrb[14].mxu1 }
0x1422   :  { %v1179_v4 = vadd.f32 %v1175_v3, %v1067_v1  ;;  %v2316_v5 = vpop.f32.mrb[15].mxu1 }
0x1424   :  { %2603 = vtanh.f32 %v1179_v4  ;;  %v2048_v7 = vmul.f32 -1.442695, %v1179_v4 }
0x1426   :  { %2605 = vpow2.f32 %v2048_v7 }
0x142e   :  { %v2604_v6 = vpop.eup %2603 }
0x142f   :  { %1189 = vrot.lane.b32.xlu0 %v2604_v6, %s2702_s16 }
0x1430   :  { %v2606_v24 = vpop.eup %2605 }
0x1431   :  { %v1183_v25 = vadd.f32 1.0, %v2606_v24 }
0x1433   :  { %2607 = vrcp.f32 %v1183_v25 }
0x143d   :  { %v2608_v11 = vpop.eup %2607 }
0x143e   :  { %v1187_v10 = vmul.f32 0.0, %v2608_v11 }
0x14a1   :  { %v1190_v8 = vpop.permute.xlu0 %1189 }
0x14a2   :  { %v1192_v9 = vmul.f32 %v2608_v11, %v1190_v8 }
0x14a4   :  { %1194 = vrot.lane.b32.xlu1 %v1192_v9, %s2703_s3 }
0x1516   :  { %v1195_v12 = vpop.permute.xlu1 %1194 }
0x1517   :  { %v1197_v18 = vadd.f32 %v1195_v12, %v1187_v10 }
0x1519   :  { %2609 = vtanh.f32 %v1197_v18 }
0x151a   :  { %2611 = vtanh.f32 %v959_v62 }
0x151b   :  { %2613 = vpow2.f32 %v2038_v20 }
0x1523   :  { %v2610_v14 = vpop.eup %2609 }
0x1524   :  { %1200 = vrot.lane.b32.xlu0 %v2610_v14, %s2702_s16  ;;  %v2612_v15 = vpop.eup %2611  ;;  %v1082_v14 = vadd.f32 %v2955_v38, %v3010_v0 }
0x1525   :  { %v2614_v16 = vpop.eup %2613 }
0x1526   :  { %v963_v17 = vadd.f32 1.0, %v2614_v16 }
0x1528   :  { %969 = vrot.lane.b32.xlu0 %v2612_v15, %s2702_s16  ;;  %2615 = vrcp.f32 %v963_v17 }
0x1532   :  { %v2616_v27 = vpop.eup %2615 }
0x1533   :  { %v967_v32 = vmul.f32 %v2616_v27, %v2965_v50 }
0x1596   :  { %v1201_v21 = vpop.permute.xlu0 %1200 }
0x1597   :  { %v1203_v23 = vmul.f32 %v2608_v11, %v1201_v21 }
0x1599   :  { %1205 = vrot.lane.b32.xlu1 %v1203_v23, %s2703_s3 }
0x159a   :  { %v970_v28 = vpop.permute.xlu0 %969 }
0x159b   :  { %v972_v30 = vmul.f32 %v2616_v27, %v970_v28 }
0x159d   :  { %974 = vrot.lane.b32.xlu0 %v972_v30, %s2703_s3 }
0x160b   :  { %v1206_v31 = vpop.permute.xlu1 %1205 }
0x160c   :  { %2326 = vmatmul.mubr.msk.f32.vlgmr.msra.gmra.mrb[16].mxu1 %vm52_vm0, %v1206_v31 }
0x160d   :  { %2497 = vmatpush3.bf16.msra.mxu1 %v2975_v54  ;;  %2347 = vmatprep.mubr.msk.f32.mxu1 %vm2700_vm1, %v2701_v19 }
0x160e   :  { %2498 = vmatprep.subr.bf16.mxu1 %v2699_v13 }
0x160f   :  { %v975_v33 = vpop.permute.xlu0 %974 }
0x1610   :  { %v977_v44 = vadd.f32 %v975_v33, %v967_v32 }
0x1611   :  { %2500 = vmatpush3.bf16.msra.mxu1 %v2985_v57 }
0x1612   :  { %2617 = vtanh.f32 %v977_v44  ;;  %2507 = vmatprep.subr.bf16.mxu1 %v2699_v13 }
0x161c   :  { %v2618_v34 = vpop.eup %2617 }
0x161d   :  { %980 = vrot.lane.b32.xlu0 %v2618_v34, %s2702_s16 }
0x168f   :  { %v981_v35 = vpop.permute.xlu0 %980 }
0x1690   :  { %v983_v36 = vmul.f32 %v2616_v27, %v981_v35 }
0x1692   :  { %996 = vrot.lane.b32.xlu0 %v983_v36, %s2703_s3 }
0x16df   :  { %v1275_v29 = vpop.f32.mrb[16].mxu1 }
0x16e0   :  { %v1279_v42 = vadd.f32 %v1275_v29, %v1072_v2  ;;  %v2327_v26 = vpop.f32.mrb[17].mxu1  ;;  %v1087_v2 = vadd.f32 %v3010_v0, %v2962_v41 }
0x16e2   :  { %2619 = vtanh.f32 %v1279_v42  ;;  %v2050_v46 = vmul.f32 -1.442695, %v1279_v42 }
0x16e4   :  { %2621 = vpow2.f32 %v2050_v46 }
0x16ec   :  { %v2620_v43 = vpop.eup %2619 }
0x16ed   :  { %1289 = vrot.lane.b32.xlu1 %v2620_v43, %s2702_s16 }
0x16ee   :  { %v2622_v47 = vpop.eup %2621 }
0x16ef   :  { %v1283_v48 = vadd.f32 1.0, %v2622_v47 }
0x16f1   :  { %2623 = vrcp.f32 %v1283_v48 }
0x16fb   :  { %v2624_v37 = vpop.eup %2623 }
0x16fc   :  { %v1287_v51 = vmul.f32 %v2624_v37, %v1197_v18 }
0x1704   :  { %v3032_v45 = vpop.permute.xlu0 %996 }
0x1705   :  { %2304 = vmatmul.mubr.msk.f32.gmra.mrb[16].mxu0 %vm52_vm0, %v3032_v45 }
0x1706   :  { %2336 = vmatprep.mubr.msk.f32.mxu0 %vm2700_vm1, %v2701_v19 }
0x175f   :  { %v1290_v49 = vpop.permute.xlu1 %1289 }
0x1760   :  { %v1292_v50 = vmul.f32 %v2624_v37, %v1290_v49 }
0x1762   :  { %1294 = vrot.lane.b32.xlu1 %v1292_v50, %s2703_s3 }
0x17d4   :  { %v1295_v52 = vpop.permute.xlu1 %1294 }
0x17d5   :  { %v1297_v53 = vadd.f32 %v1295_v52, %v1287_v51 }
0x17d7   :  { %2625 = vtanh.f32 %v1297_v53 }
0x17d8   :  { %v3039_v55 = vpop.f32.mrb[16].mxu0 }
0x17d9   :  { %v3041_v56 = vpop.f32.mrb[17].mxu0 }
0x17e1   :  { %v2626_v58 = vpop.eup %2625 }
0x17e2   :  { %1300 = vrot.lane.b32.xlu1 %v2626_v58, %s2702_s16 }
0x1854   :  { %v1301_v59 = vpop.permute.xlu1 %1300 }
0x1855   :  { %v1303_v60 = vmul.f32 %v2624_v37, %v1301_v59 }
0x1857   :  { %1305 = vrot.lane.b32.xlu1 %v1303_v60, %s2703_s3 }
0x18c9   :  { %v1306_v61 = vpop.permute.xlu1 %1305 }
0x18ca   :  { %2337 = vmatmul.mubr.msk.f32.vlgmr.msra.gmra.mrb[18].mxu0 %vm52_vm0, %v1306_v61  ;;  %v1092_v61 = vadd.f32 %v2960_v40, %v3010_v0 }
0x18cb   :  { %2503 = vmatpush3.bf16.msra.mxu0 %v2975_v54  ;;  %2358 = vmatprep.mubr.msk.f32.mxu0 %vm2700_vm1, %v2701_v19 }
0x18cc   :  { %2504 = vmatprep.subr.bf16.mxu0 %v2699_v13 }
0x18cf   :  { %2506 = vmatpush3.bf16.msra.mxu0 %v2985_v57 }
0x18d0   :  { %2513 = vmatprep.subr.bf16.mxu0 %v2699_v13 }
0x199d   :  { %v1375_v62 = vpop.f32.mrb[18].mxu0 }
0x199e   :  { %v1379_v63 = vadd.f32 %v1375_v62, %v1077_v22  ;;  %v2338_v1 = vpop.f32.mrb[19].mxu0 }
0x19a0   :  { %2627 = vtanh.f32 %v1379_v63  ;;  %v2052_v4 = vmul.f32 -1.442695, %v1379_v63 }
0x19a2   :  { %2629 = vpow2.f32 %v2052_v4 }
0x19aa   :  { %v2628_v3 = vpop.eup %2627 }
0x19ab   :  { %1389 = vrot.lane.b32.xlu0 %v2628_v3, %s2702_s16 }
0x19ac   :  { %v2630_v5 = vpop.eup %2629 }
0x19ad   :  { %v1383_v6 = vadd.f32 1.0, %v2630_v5 }
0x19af   :  { %2631 = vrcp.f32 %v1383_v6 }
0x19b9   :  { %v2632_v7 = vpop.eup %2631 }
0x19ba   :  { %v1387_v11 = vmul.f32 %v2632_v7, %v1297_v53 }
0x1a1d   :  { %v1390_v24 = vpop.permute.xlu0 %1389 }
0x1a1e   :  { %v1392_v25 = vmul.f32 %v2632_v7, %v1390_v24 }
0x1a20   :  { %1394 = vrot.lane.b32.xlu1 %v1392_v25, %s2703_s3 }
0x1a92   :  { %v1395_v8 = vpop.permute.xlu1 %1394 }
0x1a93   :  { %v1397_v39 = vadd.f32 %v1395_v8, %v1387_v11 }
0x1a95   :  { %2633 = vtanh.f32 %v1397_v39 }
0x1a9f   :  { %v2634_v9 = vpop.eup %2633 }
0x1aa0   :  { %1400 = vrot.lane.b32.xlu0 %v2634_v9, %s2702_s16  ;;  %v1097_v9 = vadd.f32 %v3010_v0, %v3041_v56 }
0x1b12   :  { %v1401_v10 = vpop.permute.xlu0 %1400 }
0x1b13   :  { %v1403_v12 = vmul.f32 %v2632_v7, %v1401_v10 }
0x1b15   :  { %1405 = vrot.lane.b32.xlu1 %v1403_v12, %s2703_s3 }
0x1b87   :  { %v1406_v18 = vpop.permute.xlu1 %1405 }
0x1b88   :  { %2348 = vmatmul.mubr.msk.f32.vlgmr.msra.gmra.mrb[18].mxu1 %vm52_vm0, %v1406_v18 }
0x1b89   :  { %2509 = vmatpush3.bf16.msra.mxu1 %v2975_v54  ;;  %2369 = vmatprep.mubr.msk.f32.mxu1 %vm2700_vm1, %v2701_v19 }
0x1b8a   :  { %2510 = vmatprep.subr.bf16.mxu1 %v2699_v13 }
0x1b8d   :  { %2512 = vmatpush3.bf16.msra.mxu1 %v2985_v57 }
0x1b8e   :  { %2519 = vmatprep.subr.bf16.mxu1 %v2699_v13 }
0x1c5b   :  { %v1475_v15 = vpop.f32.mrb[18].mxu1 }
0x1c5c   :  { %v1479_v20 = vadd.f32 %v1475_v15, %v1082_v14  ;;  %v2349_v16 = vpop.f32.mrb[19].mxu1 }
0x1c5e   :  { %2635 = vtanh.f32 %v1479_v20  ;;  %v2054_v21 = vmul.f32 -1.442695, %v1479_v20 }
0x1c60   :  { %2637 = vpow2.f32 %v2054_v21 }
0x1c68   :  { %v2636_v17 = vpop.eup %2635 }
0x1c69   :  { %1489 = vrot.lane.b32.xlu0 %v2636_v17, %s2702_s16 }
0x1c6a   :  { %v2638_v23 = vpop.eup %2637 }
0x1c6b   :  { %v1483_v27 = vadd.f32 1.0, %v2638_v23 }
0x1c6d   :  { %2639 = vrcp.f32 %v1483_v27 }
0x1c77   :  { %v2640_v28 = vpop.eup %2639 }
0x1c78   :  { %v1487_v32 = vmul.f32 %v2640_v28, %v1397_v39 }
0x1cdb   :  { %v1490_v30 = vpop.permute.xlu0 %1489 }
0x1cdc   :  { %v1492_v31 = vmul.f32 %v2640_v28, %v1490_v30 }
0x1cde   :  { %1494 = vrot.lane.b32.xlu1 %v1492_v31, %s2703_s3 }
0x1d50   :  { %v1495_v33 = vpop.permute.xlu1 %1494 }
0x1d51   :  { %v1497_v38 = vadd.f32 %v1495_v33, %v1487_v32  ;;  %v1102_v33 = vadd.f32 %v3039_v55, %v3010_v0  ;;  %v1910_v55 = vld [vmem:[%s3163_s7] sm:$0xff] }
0x1d53   :  { %2641 = vtanh.f32 %v1497_v38 }
0x1d5d   :  { %v2642_v44 = vpop.eup %2641 }
0x1d5e   :  { %1500 = vrot.lane.b32.xlu0 %v2642_v44, %s2702_s16 }
0x1dd0   :  { %v1501_v34 = vpop.permute.xlu0 %1500 }
0x1dd1   :  { %v1503_v35 = vmul.f32 %v2640_v28, %v1501_v34 }
0x1dd3   :  { %1505 = vrot.lane.b32.xlu1 %v1503_v35, %s2703_s3 }
0x1e45   :  { %v1506_v36 = vpop.permute.xlu1 %1505 }
0x1e46   :  { %2359 = vmatmul.mubr.msk.f32.vlgmr.msra.gmra.mrb[20].mxu0 %vm52_vm0, %v1506_v36 }
0x1e47   :  { %2515 = vmatpush3.bf16.msra.mxu0 %v2975_v54  ;;  %2380 = vmatprep.mubr.msk.f32.mxu0 %vm2700_vm1, %v2701_v19 }
0x1e48   :  { %2516 = vmatprep.subr.bf16.mxu0 %v2699_v13 }
0x1e4b   :  { %2518 = vmatpush3.bf16.msra.mxu0 %v2985_v57 }
0x1e4c   :  { %2525 = vmatprep.subr.bf16.mxu0 %v2699_v13 }
0x1f19   :  { %v1575_v29 = vpop.f32.mrb[20].mxu0 }
0x1f1a   :  { %v1579_v42 = vadd.f32 %v1575_v29, %v1087_v2  ;;  %v2360_v26 = vpop.f32.mrb[21].mxu0 }
0x1f1c   :  { %2643 = vtanh.f32 %v1579_v42  ;;  %v2056_v46 = vmul.f32 -1.442695, %v1579_v42 }
0x1f1e   :  { %2645 = vpow2.f32 %v2056_v46 }
0x1f26   :  { %v2644_v43 = vpop.eup %2643 }
0x1f27   :  { %1589 = vrot.lane.b32.xlu0 %v2644_v43, %s2702_s16 }
0x1f28   :  { %v2646_v47 = vpop.eup %2645 }
0x1f29   :  { %v1583_v48 = vadd.f32 1.0, %v2646_v47 }
0x1f2b   :  { %2647 = vrcp.f32 %v1583_v48  ;;  %v1911_v48 = vld [vmem:[%s3163_s7 + $0x8] sm:$0xff] }
0x1f35   :  { %v2648_v37 = vpop.eup %2647 }
0x1f36   :  { %v1587_v51 = vmul.f32 %v2648_v37, %v1497_v38 }
0x1f99   :  { %v1590_v49 = vpop.permute.xlu0 %1589 }
0x1f9a   :  { %v1592_v50 = vmul.f32 %v2648_v37, %v1590_v49  ;;  %v2526_v49 = vpack.c.bf16 %v1911_v48, %v1910_v55 }
0x1f9c   :  { %1594 = vrot.lane.b32.xlu1 %v1592_v50, %s2703_s3  ;;  %v1913_v50 = vld [vmem:[%s3163_s7 + $0x18] sm:$0xff] }
0x200e   :  { %v1595_v52 = vpop.permute.xlu1 %1594 }
0x200f   :  { %v1597_v41 = vadd.f32 %v1595_v52, %v1587_v51  ;;  %v1914_v52 = vld [vmem:[%s3163_s7 + $0x20] sm:$0xff] }
0x2011   :  { %2649 = vtanh.f32 %v1597_v41 }
0x201b   :  { %v2650_v53 = vpop.eup %2649 }
0x201c   :  { %1600 = vrot.lane.b32.xlu0 %v2650_v53, %s2702_s16 }
0x208e   :  { %v1601_v58 = vpop.permute.xlu0 %1600 }
0x208f   :  { %v1603_v59 = vmul.f32 %v2648_v37, %v1601_v58  ;;  %v1912_v37 = vld [vmem:[%s3163_s7 + $0x10] sm:$0xff] }
0x2090   :  { %v2529_v51 = vpack.c.bf16 %v1913_v50, %v1912_v37  ;;  %v1916_v58 = vld [vmem:[%s3163_s7 + $0x30] sm:$0xff] }
0x2091   :  { %1605 = vrot.lane.b32.xlu1 %v1603_v59, %s2703_s3  ;;  %v1917_v59 = vld [vmem:[%s3163_s7 + $0x38] sm:$0xff] }
0x2103   :  { %v1606_v60 = vpop.permute.xlu1 %1605 }
0x2104   :  { %2370 = vmatmul.mubr.msk.f32.vlgmr.msra.gmra.mrb[20].mxu1 %vm52_vm0, %v1606_v60 }
0x2105   :  { %2521 = vmatpush3.bf16.msra.mxu1 %v2975_v54  ;;  %2391 = vmatprep.mubr.msk.f32.mxu1 %vm2700_vm1, %v2701_v19 }
0x2106   :  { %2522 = vmatprep.subr.bf16.mxu1 %v2699_v13 }
0x2109   :  { %2524 = vmatpush3.bf16.msra.mxu1 %v2985_v57 }
0x21d7   :  { %v1675_v22 = vpop.f32.mrb[20].mxu1 }
0x21d8   :  { %v1679_v62 = vadd.f32 %v1675_v22, %v1092_v61  ;;  %v2371_v63 = vpop.f32.mrb[21].mxu1  ;;  %v2535_v61 = vpack.c.bf16 %v1917_v59, %v1916_v58 }
0x21da   :  { %2651 = vtanh.f32 %v1679_v62  ;;  %v2058_v3 = vmul.f32 -1.442695, %v1679_v62 }
0x21dc   :  { %2653 = vpow2.f32 %v2058_v3  ;;  %v2063_v3 = vld [vmem:[%s3164_s8] ss:$0 sm:$0xff] }
0x21e4   :  { %v2652_v1 = vpop.eup %2651 }
0x21e5   :  { %1689 = vrot.lane.b32.xlu0 %v2652_v1, %s2702_s16 }
0x21e6   :  { %v2654_v54 = vpop.eup %2653 }
0x21e7   :  { %v1683_v4 = vadd.f32 1.0, %v2654_v54 }
0x21e9   :  { %2655 = vrcp.f32 %v1683_v4 }
0x21f3   :  { %v2656_v5 = vpop.eup %2655 }
0x21f4   :  { %v1687_v57 = vmul.f32 %v2656_v5, %v1597_v41  ;;  %v1915_v41 = vld [vmem:[%s3163_s7 + $0x28] sm:$0xff] }
0x21f5   :  { %v2532_v53 = vpack.c.bf16 %v1915_v41, %v1914_v52 }
0x2257   :  { %v1690_v6 = vpop.permute.xlu0 %1689 }
0x2258   :  { %v1692_v7 = vmul.f32 %v2656_v5, %v1690_v6 }
0x225a   :  { %1694 = vrot.lane.b32.xlu1 %v1692_v7, %s2703_s3 }
0x22cc   :  { %v1695_v24 = vpop.permute.xlu1 %1694 }
0x22cd   :  { %v1697_v40 = vadd.f32 %v1695_v24, %v1687_v57 }
0x22cf   :  { %2657 = vtanh.f32 %v1697_v40 }
0x22d9   :  { %v2658_v25 = vpop.eup %2657 }
0x22da   :  { %1700 = vrot.lane.b32.xlu0 %v2658_v25, %s2702_s16 }
0x234c   :  { %v1701_v11 = vpop.permute.xlu0 %1700 }
0x234d   :  { %v1703_v8 = vmul.f32 %v2656_v5, %v1701_v11 }
0x234f   :  { %1705 = vrot.lane.b32.xlu1 %v1703_v8, %s2703_s3 }
0x23c1   :  { %v1706_v39 = vpop.permute.xlu1 %1705 }
0x23c2   :  { %2381 = vmatmul.mubr.msk.f32.vlgmr.msra.gmra.mrb[22].mxu0 %vm52_vm0, %v1706_v39 }
0x23c3   :  { %2410 = vmatprep.mubr.msk.f32.mxu0 %vm2700_vm1, %v2701_v19  ;;  %2527 = vmatpush3.bf16.msra.mxu0 %v2526_v49 }
0x23c4   :  { %2528 = vmatprep.subr.bf16.mxu0 %v2699_v13 }
0x23c7   :  { %2530 = vmatpush3.bf16.msra.mxu0 %v2529_v51 }
0x23c8   :  { %2531 = vmatprep.subr.bf16.mxu0 %v2699_v13 }
0x23cb   :  { %2533 = vmatpush3.bf16.msra.mxu0 %v2532_v53 }
0x23cc   :  { %2534 = vmatprep.subr.bf16.mxu0 %v2699_v13 }
0x23cf   :  { %2536 = vmatpush3.bf16.msra.mxu0 %v2535_v61 }
0x2495   :  { %v1775_v10 = vpop.f32.mrb[22].mxu0 }
0x2496   :  { %v1779_v12 = vadd.f32 %v1775_v10, %v1097_v9  ;;  %v2382_v18 = vpop.f32.mrb[23].mxu0 }
0x2498   :  { %2659 = vtanh.f32 %v1779_v12  ;;  %v2060_v15 = vmul.f32 -1.442695, %v1779_v12 }
0x249a   :  { %2661 = vpow2.f32 %v2060_v15 }
0x24a2   :  { %v2660_v14 = vpop.eup %2659 }
0x24a3   :  { %1789 = vrot.lane.b32.xlu0 %v2660_v14, %s2702_s16 }
0x24a4   :  { %v2662_v20 = vpop.eup %2661 }
0x24a5   :  { %v1783_v16 = vadd.f32 1.0, %v2662_v20 }
0x24a7   :  { %2663 = vrcp.f32 %v1783_v16 }
0x24b1   :  { %v2664_v17 = vpop.eup %2663 }
0x24b2   :  { %v1787_v19 = vmul.f32 %v2664_v17, %v1697_v40 }
0x2515   :  { %v1790_v21 = vpop.permute.xlu0 %1789 }
0x2516   :  { %v1792_v23 = vmul.f32 %v2664_v17, %v1790_v21 }
0x2518   :  { %1794 = vrot.lane.b32.xlu1 %v1792_v23, %s2703_s3 }
0x258a   :  { %v1795_v27 = vpop.permute.xlu1 %1794 }
0x258b   :  { %v1797_v56 = vadd.f32 %v1795_v27, %v1787_v19 }
0x258d   :  { %2665 = vtanh.f32 %v1797_v56 }
0x2597   :  { %v2666_v28 = vpop.eup %2665 }
0x2598   :  { %1800 = vrot.lane.b32.xlu0 %v2666_v28, %s2702_s16 }
0x260a   :  { %v1801_v30 = vpop.permute.xlu0 %1800 }
0x260b   :  { %v1803_v31 = vmul.f32 %v2664_v17, %v1801_v30 }
0x260d   :  { %1805 = vrot.lane.b32.xlu1 %v1803_v31, %s2703_s3 }
0x267f   :  { %v1806_v32 = vpop.permute.xlu1 %1805 }
0x2680   :  { %2392 = vmatmul.mubr.msk.f32.vlgmr.msra.gmra.mrb[22].mxu1 %vm52_vm0, %v1806_v32 }
0x2753   :  { %v1875_v38 = vpop.f32.mrb[22].mxu1 }
0x2754   :  { %v1879_v44 = vadd.f32 %v1875_v38, %v1102_v33  ;;  %v2393_v34 = vpop.f32.mrb[23].mxu1 }
0x2756   :  { %2667 = vtanh.f32 %v1879_v44  ;;  %v2062_v36 = vmul.f32 -1.442695, %v1879_v44 }
0x2758   :  { %2669 = vpow2.f32 %v2062_v36 }
0x2760   :  { %v2668_v35 = vpop.eup %2667 }
0x2761   :  { %1889 = vrot.lane.b32.xlu0 %v2668_v35, %s2702_s16 }
0x2762   :  { %v2670_v2 = vpop.eup %2669 }
0x2763   :  { %v1883_v29 = vadd.f32 1.0, %v2670_v2 }
0x2765   :  { %2671 = vrcp.f32 %v1883_v29 }
0x276f   :  { %v2672_v42 = vpop.eup %2671 }
0x2770   :  { %v1887_v46 = vmul.f32 %v2672_v42, %v1797_v56 }
0x27d3   :  { %v1890_v26 = vpop.permute.xlu0 %1889 }
0x27d4   :  { %v1892_v43 = vmul.f32 %v2672_v42, %v1890_v26 }
0x27d6   :  { %1894 = vrot.lane.b32.xlu1 %v1892_v43, %s2703_s3 }
0x2848   :  { %v1895_v47 = vpop.permute.xlu1 %1894 }
0x2849   :  { %v1897_v0 = vadd.f32 %v1895_v47, %v1887_v46 }
0x284b   :  { %2673 = vtanh.f32 %v1897_v0 }
0x2855   :  { %v2674_v60 = vpop.eup %2673 }
0x2856   :  { %1900 = vrot.lane.b32.xlu0 %v2674_v60, %s2702_s16 }
0x28c8   :  { %v1901_v22 = vpop.permute.xlu0 %1900 }
0x28c9   :  { %v1903_v62 = vmul.f32 %v2672_v42, %v1901_v22 }
0x28cb   :  { %1906 = vrot.lane.b32.xlu1 %v1903_v62, %s2702_s16 }
0x293d   :  { %v1907_v63 = vpop.permute.xlu1 %1906 }
0x293e   :  { %v1909_v1 = vsel %vm52_vm0, %v3032_v45, %v1907_v63 }
0x293f   :  { %2411 = vmatmul.mubr.msk.f32.vlgmr.msra.gmra.mrb[24].mxu0 %vm1925_vm2, %v1909_v1 }
0x2a12   :  { %v1995_v54 = vpop.f32.mrb[24].mxu0 }
0x2a13   :  { %v1996_v13 = vadd.f32 %v2063_v3, %v1995_v54  ;;  %v2412_v4 = vpop.f32.mrb[25].mxu0 }
0x2a15   :  { %2000 = vst.msk [vmem:[#allocation2] sm:$0xff] %vm1999_vm3, %v1996_v13 }
0x2a16   :  { %2686 = shalt.err (!%p2683_p4)
}
0x2a17   :  { %s2687_s30 = scalar_lea.hbm %s3165_s9, 128 }
0x2a18   :  { %p2688_p5 = scmp.ne.s32.totalorder %s3165_s9, %s2687_s30  ;;  %p2691_p6 = scmp.lt.u32.totalorder %s2687_s30, %s3165_s9 }
0x2a1a   :  { %p2693_p7 = pnand %p2691_p6, %p2688_p5 }
0x2a1c   :  { %2696 = shalt.err (!%p2693_p7)
}
0x2a1d   :  { %2010 = dma.vmem_to_hbm [thread:$0]  %s2008_s27, 128, %s3165_s9, [#allocation3]  }
0x2a1e   :  { %2697 = dma.done.wait [#allocation3], 128  }
0x2a1f   :  { %2698 = vsyncadd [#allocation3], 4294967168 }
0x2a20   :  { %2014 = vsyncpa [#allocation3], 1 }

</bundles_post_ra>
